<compile_context>
chip_gen: v6e
topology: v6e:2x2x1
jax: 0.10.0
libtpu: 0.0.40
codegen_flags: <defaults>
</compile_context>

<pallas_src>
import functools

import jax
import jax.numpy as jnp
from jax.experimental import pallas as pl
from jax.experimental.pallas import tpu as pltpu

LANE = 128
SUBLANE = 8


def _round_up(n, m):
    return (n + m - 1) // m * m


# --------------------------------------------------------------------------------------
# Kernel: chunked LSTM recurrence + fused head
# --------------------------------------------------------------------------------------
def _lstm_head_kernel(x_ref, w_ih_ref, b_ref, w_hh_ref,
                      w1_ref, b1_ref, w2_ref, b2_ref,
                      out_ref, h_sc, c_sc, gx_sc,
                      *, time_chunk, batch_blk, hidden_p, seq_len):
    """Grid = (batch_blocks, time_chunks); one step = `time_chunk` timesteps of one
    batch block.

    x_ref    : (Tc*Bb, D)      bf16  input chunk (time-major, batch-block rows)
    w_ih_ref : (D, 4*H1p)      bf16  input->gates weights (lane-aligned gates)
    b_ref    : (1, 4*H1p)      f32   b_ih + b_hh
    w_hh_ref : (H1p, 4*H1p)    bf16  hidden->gates weights
    w1/b1    : (H1p, H2),(1,H2) f32  r2h Linear
    w2/b2    : (H2, O), (1, O) f32   h2o Linear
    out_ref  : (Bb, O)         f32   head output (written on the final time chunk)
    h_sc,c_sc: (Bb, H1p)       f32   carried LSTM state (VMEM scratch)
    gx_sc    : (Tc*Bb, 4*H1p)  f32   hoisted input projection for the whole chunk
    """
    chunk = pl.program_id(1)
    n_chunks = pl.num_programs(1)
    Bb = batch_blk
    H = hidden_p

    @pl.when(chunk == 0)
    def _init():
        h_sc[...] = jnp.zeros_like(h_sc)
        c_sc[...] = jnp.zeros_like(c_sc)

    # Hoisted input projection: ONE MXU matmul with M = Tc*Bb rows per grid step (bias
    # folded in).  The per-timestep loop below only does the small recurrent matmul.
    gx_sc[...] = (
        jnp.dot(x_ref[...], w_ih_ref[...], preferred_element_type=jnp.float32)
        + b_ref[...])

    needs_mask = (seq_len % time_chunk) != 0   # static: only padded tails need masking

    def step(t, carry):
        h, c = carry                              # f32 (Bb, H1p)
        row = pl.multiple_of(t * Bb, Bb)
        gx_t = gx_sc[pl.ds(row, Bb), :]           # (Bb, 4*H1p)
        # W_hh is read from VMEM here (not hoisted) so the unrolled body does not pin
        # a multi-KiB constant across iterations in the 64-entry vreg file.
        gates = gx_t + jnp.dot(h.astype(jnp.bfloat16), w_hh_ref[...],
                               preferred_element_type=jnp.float32)
        # PyTorch gate order [i, f, g, o]; each slice is a lane-aligned chunk (H is a
        # multiple of 128), so slicing costs no XLU lane shuffles.
        i_g = jax.nn.sigmoid(gates[:, 0 * H:1 * H])
        f_g = jax.nn.sigmoid(gates[:, 1 * H:2 * H])
        g_g = jnp.tanh(gates[:, 2 * H:3 * H])
        o_g = jax.nn.sigmoid(gates[:, 3 * H:4 * H])
        c_new = f_g * c + i_g * g_g
        h_new = o_g * jnp.tanh(c_new)
        if needs_mask:
            # Tail chunk: timesteps >= seq_len are zero padding; freeze the state.
            valid = (chunk * time_chunk + t) < seq_len
            h_new = jnp.where(valid, h_new, h)
            c_new = jnp.where(valid, c_new, c)
        return h_new, c_new

    # Fully unroll small chunks (LLO sees the whole dependency chain); partially unroll
    # when the per-step gate vregs would blow the register file.
    unroll = True if Bb * 4 * H * 4 <= 16 * 1024 else min(4, time_chunk)
    h, c = jax.lax.fori_loop(0, time_chunk, step, (h_sc[...], c_sc[...]),
                             unroll=unroll)
    h_sc[...] = h
    c_sc[...] = c

    # Fused head (r2h -> ReLU -> h2o) on the final hidden state of this batch block.
    # NOTE: out_ref's index_map is constant along the time axis, so this block is only
    # written back to HBM after the final chunk of this batch block -- do not change
    # the out index_map without also writing out_ref on every chunk.
    @pl.when(chunk == n_chunks - 1)
    def _finalize():
        fc1 = jnp.maximum(
            jnp.dot(h, w1_ref[...], preferred_element_type=jnp.float32)
            + b1_ref[...], 0.0)
        out_ref[...] = (
            jnp.dot(fc1, w2_ref[...], preferred_element_type=jnp.float32)
            + b2_ref[...]).astype(out_ref.dtype)


# --------------------------------------------------------------------------------------
# One-time parameter packing (hoisted out of the per-call wrapper)
# --------------------------------------------------------------------------------------
def prepare_params(params):
    """Pack PyTorch-layout LSTM/Linear weights into the kernel layout.  Call ONCE."""
    f32, bf16 = jnp.float32, jnp.bfloat16
    H1 = params["w_hh"].shape[1]
    D = params["w_ih"].shape[1]
    H2 = params["w_r2h"].shape[0]
    O = params["w_h2o"].shape[0]
    H1p = _round_up(H1, LANE)          # each gate padded to a lane-aligned chunk
    G = 4 * H1p

    # Input weights: (4*H1, D) -> (D, 4*H1p), gate-major lane-aligned columns.
    w_ih = params["w_ih"].reshape(4, H1, D)
    w_ih_p = jnp.zeros((4, H1p, D), f32).at[:, :H1, :].set(w_ih)
    w_ih_t = jnp.transpose(w_ih_p, (2, 0, 1)).reshape(D, G).astype(bf16)

    # Recurrent weights: (4*H1, H1) -> (H1p, 4*H1p); padded rows/cols are zero so the
    # padded h lanes (which stay exactly 0) never leak into real gates.
    w_hh = params["w_hh"].reshape(4, H1, H1)
    w_hh_p = jnp.zeros((4, H1p, H1p), f32).at[:, :H1, :H1].set(w_hh)
    w_hh_t = jnp.transpose(w_hh_p, (2, 0, 1)).reshape(H1p, G).astype(bf16)

    # Fused bias (b_ih + b_hh), gate-major lane-aligned.
    b = (params["b_ih"] + params["b_hh"]).reshape(4, H1)
    b_p = jnp.zeros((4, H1p), f32).at[:, :H1].set(b).reshape(1, G)

    # Head weights (f32; used once per forward, padded h rows are zero-weighted).
    w_r2h_t = jnp.zeros((H1p, H2), f32).at[:H1, :].set(params["w_r2h"].T)
    b_r2h = params["b_r2h"].reshape(1, H2)
    w_h2o_t = params["w_h2o"].T
    b_h2o = params["b_h2o"].reshape(1, O)

    return {"w_ih_t": w_ih_t, "w_hh_t": w_hh_t, "bias": b_p,
            "w_r2h_t": w_r2h_t, "b_r2h": b_r2h,
            "w_h2o_t": w_h2o_t, "b_h2o": b_h2o}


# --------------------------------------------------------------------------------------
# VMEM-budget-driven planning
# --------------------------------------------------------------------------------------
def _vmem_capacity_bytes():
    try:
        return int(pltpu.get_tpu_info().vmem_capacity_bytes)
    except Exception:
        return 64 * 1024 * 1024        # conservative fallback (v7x-sized VMEM)


def _plan(T, D, Bb, G, H1p, H2, O, time_chunk):
    """Pick time_chunk and vmem_limit from the chip's VMEM budget."""
    cap = _vmem_capacity_bytes()
    budget = int(cap * 0.7)
    fixed = (D + H1p) * G * 2                       # W_ih^T + W_hh^T, bf16, Buffered(1)
    fixed += G * 4                                  # fused bias (f32)
    fixed += (H1p * H2 + H2 * O + H2 + O) * 4       # head weights / biases
    fixed += 2 * Bb * H1p * 4                       # h / c scratch
    fixed += 2 * Bb * O * 4                         # out block (double-buffered)
    fixed += 2 * 1024 * 1024                        # compiler-internal slack
    per_tc = Bb * (2 * D * 2 + G * 4)               # x chunk (bf16, 2 bufs) + gx_sc f32

    if time_chunk is None:
        tc = (budget - fixed) // per_tc if budget > fixed else 1
        tc = int(max(1, min(tc, 64, T)))
    else:
        tc = int(max(1, min(time_chunk, T)))
    if tc < T and (tc * Bb) % 16 != 0:
        tc += 1        # keep the bf16 x-chunk block sublane-tile aligned across steps
    if tc >= T:
        tc = T         # single chunk: block equals the full dim, no alignment issue

    vmem_limit = min(int(cap * 0.9),
                     max(budget, fixed + tc * per_tc + (4 << 20)))
    return tc, int(vmem_limit)


def _default_batch_blocks(B):
    # v7x has two TensorCores per chip: split independent batch rows across them when
    # each block still has at least one full sublane of rows.  Harmless elsewhere.
    try:
        nc = int(getattr(jax.devices()[0], "num_cores", 1) or 1)
    except Exception:
        nc = 1
    return nc if (nc > 1 and _round_up(B, SUBLANE) >= SUBLANE * nc) else 1


# --------------------------------------------------------------------------------------
# Forward wrapper
# --------------------------------------------------------------------------------------
def rnn_forward(x, packed, *, time_chunk=None, batch_blocks=None):
    """x: (T, B, input_size) float32 (seq-first, nn.LSTM default layout).
    `packed` comes from prepare_params().  Returns (B, output_size) float32."""
    T, B, D = x.shape
    H1p, G = packed["w_hh_t"].shape
    H2 = packed["w_r2h_t"].shape[1]
    O = packed["w_h2o_t"].shape[1]
    assert packed["w_ih_t"].shape == (D, G), "input_size mismatch with packed params"

    nb = batch_blocks if batch_blocks is not None else _default_batch_blocks(B)
    nb = max(1, int(nb))
    Bp = _round_up(B, SUBLANE * nb)     # pad batch so every block is sublane-dense
    Bb = Bp // nb

    Tc, vmem_limit = _plan(T, D, Bb, G, H1p, H2, O, time_chunk)
    T_pad = _round_up(T, Tc)            # tail timesteps are zero-padded + masked
    n_chunks = T_pad // Tc

    f32, bf16 = jnp.float32, jnp.bfloat16

    # Input: pad (time tail / batch) and cast to bf16 only when needed, then lay out as
    # (nb, T_pad*Bb, D) so each grid step DMAs one dense, lane-aligned 2-D block.
    if T_pad == T and Bp == B:
        x_p = x.astype(bf16)
    else:
        x_p = jnp.zeros((T_pad, Bp, D), bf16).at[:T, :B, :].set(x.astype(bf16))
    if nb == 1:
        x2 = x_p.reshape(1, T_pad * Bp, D)                      # free reshape
    else:
        x2 = (x_p.reshape(T_pad, nb, Bb, D)                     # one-time relayout that
                 .transpose(1, 0, 2, 3)                         # enables the 2-TC split
                 .reshape(nb, T_pad * Bb, D))

    kernel = functools.partial(_lstm_head_kernel, time_chunk=Tc, batch_blk=Bb,
                               hidden_p=H1p, seq_len=T)

    const = lambda b, t: (0, 0)          # weight/bias specs: index never changes ...
    single = pl.Buffered(1)              # ... so one VMEM buffer suffices (no 2x copy)

    out_p = pl.pallas_call(
        kernel,
        out_shape=jax.ShapeDtypeStruct((Bp, O), f32),
        grid_spec=pltpu.PrefetchScalarGridSpec(
            num_scalar_prefetch=0,
            grid=(nb, n_chunks),
            in_specs=[
                pl.BlockSpec((None, Tc * Bb, D), lambda b, t: (b, t, 0)),   # x chunk
                pl.BlockSpec((D, G), const, pipeline_mode=single),          # W_ih^T
                pl.BlockSpec((1, G), const, pipeline_mode=single),          # bias
                pl.BlockSpec((H1p, G), const, pipeline_mode=single),        # W_hh^T
                pl.BlockSpec((H1p, H2), const, pipeline_mode=single),       # W_r2h^T
                pl.BlockSpec((1, H2), const, pipeline_mode=single),         # b_r2h
                pl.BlockSpec((H2, O), const, pipeline_mode=single),         # W_h2o^T
                pl.BlockSpec((1, O), const, pipeline_mode=single),          # b_h2o
            ],
            out_specs=pl.BlockSpec((Bb, O), lambda b, t: (b, 0)),
            scratch_shapes=[
                pltpu.VMEM((Bb, H1p), f32),        # h state
                pltpu.VMEM((Bb, H1p), f32),        # c state
                pltpu.VMEM((Tc * Bb, G), f32),     # hoisted chunk input projection
            ],
        ),
        compiler_params=pltpu.CompilerParams(
            # batch blocks are independent (megacore-parallel); time is a recurrence
            dimension_semantics=("parallel", "arbitrary"),
            vmem_limit_bytes=vmem_limit,
        ),
    )(x2, packed["w_ih_t"], packed["bias"], packed["w_hh_t"],
      packed["w_r2h_t"], packed["b_r2h"], packed["w_h2o_t"], packed["b_h2o"])

    return out_p[:B]


# --------------------------------------------------------------------------------------
# Pure-JAX reference + init
# --------------------------------------------------------------------------------------
def rnn_reference(x, params, matmul_dtype=jnp.float32):
    """Reference mirroring nn.LSTM + Linear/ReLU/Linear on the last timestep.
    `matmul_dtype` lets the reference use the kernel's bf16 MXU-input precision."""
    T, B, D = x.shape
    H1 = params["w_hh"].shape[1]
    md = matmul_dtype
    w_ih_t = params["w_ih"].T.astype(md)
    w_hh_t = params["w_hh"].T.astype(md)
    b = params["b_ih"] + params["b_hh"]
    h = jnp.zeros((B, H1), jnp.float32)
    c = jnp.zeros((B, H1), jnp.float32)
    for t in range(T):
        gates = (jnp.dot(x[t].astype(md), w_ih_t, preferred_element_type=jnp.float32)
                 + jnp.dot(h.astype(md), w_hh_t, preferred_element_type=jnp.float32)
                 + b)
        i_g = jax.nn.sigmoid(gates[:, 0 * H1:1 * H1])
        f_g = jax.nn.sigmoid(gates[:, 1 * H1:2 * H1])
        g_g = jnp.tanh(gates[:, 2 * H1:3 * H1])
        o_g = jax.nn.sigmoid(gates[:, 3 * H1:4 * H1])
        c = f_g * c + i_g * g_g
        h = o_g * jnp.tanh(c)
    fc1 = jnp.maximum(h @ params["w_r2h"].T + params["b_r2h"], 0.0)
    return fc1 @ params["w_h2o"].T + params["b_h2o"]


def init_params(key, input_size, hidden1, hidden2, output_size):
    ks = jax.random.split(key, 8)
    s1 = 1.0 / jnp.sqrt(hidden1)
    s2 = 1.0 / jnp.sqrt(hidden2)
    u = lambda k, shape, s: jax.random.uniform(k, shape, jnp.float32, -s, s)
    return {
        # nn.LSTM params (gate order i, f, g, o)
        "w_ih": u(ks[0], (4 * hidden1, input_size), s1),
        "w_hh": u(ks[1], (4 * hidden1, hidden1), s1),
        "b_ih": u(ks[2], (4 * hidden1,), s1),
        "b_hh": u(ks[3], (4 * hidden1,), s1),
        # r2h Linear
        "w_r2h": u(ks[4], (hidden2, hidden1), s1),
        "b_r2h": u(ks[5], (hidden2,), s1),
        # h2o Linear
        "w_h2o": u(ks[6], (output_size, hidden2), s2),
        "b_h2o": u(ks[7], (output_size,), s2),
    }


if __name__ == "__main__":
    key = jax.random.PRNGKey(0)
    k1, k2, k3, k4 = jax.random.split(key, 4)

    # Config 1: small batch, T not a multiple of the chunk (masked tail + state carry).
    T, B = 10, 2
    input_size, hidden1, hidden2, output_size = 16, 32, 32, 8
    x = jax.random.normal(k1, (T, B, input_size), jnp.float32)
    params = init_params(k2, input_size, hidden1, hidden2, output_size)
    packed = prepare_params(params)

    out = jax.block_until_ready(rnn_forward(x, packed, time_chunk=4))   # 3 chunks, 2 masked
    ref = rnn_reference(x, params, matmul_dtype=jnp.bfloat16)
    assert out.shape == (B, output_size)
    assert jnp.allclose(out, ref, atol=2e-3, rtol=2e-3), "config-1 mismatch vs reference"

    out_auto = jax.block_until_ready(rnn_forward(x, packed))            # budget-driven Tc
    assert jnp.allclose(out_auto, ref, atol=2e-3, rtol=2e-3), "config-1 auto-Tc mismatch"

    # Config 2: larger batch split into 2 blocks (dual-TensorCore path), non-128 hidden
    # size and odd head widths, masked tail with the batch split active.
    T2, B2 = 9, 16
    in2, h1_2, h2_2, o2 = 12, 48, 24, 5
    x_b = jax.random.normal(k3, (T2, B2, in2), jnp.float32)
    params2 = init_params(k4, in2, h1_2, h2_2, o2)
    packed2 = prepare_params(params2)

    out2 = jax.block_until_ready(
        rnn_forward(x_b, packed2, time_chunk=4, batch_blocks=2))
    ref2 = rnn_reference(x_b, params2, matmul_dtype=jnp.bfloat16)
    assert out2.shape == (B2, o2)
    assert jnp.allclose(out2, ref2, atol=2e-3, rtol=2e-3), "config-2 mismatch vs reference"

    print("KERNEL_OK")
</pallas_src>

<mosaic_0001>
module attributes {stable_mosaic.version = 11 : i64} {
  func.func @_lstm_head_kernel(%arg0: i32, %arg1: i32, %arg2: memref<1x32x16xbf16, #tpu.memory_space<vmem>>, %arg3: memref<16x512xbf16, #tpu.memory_space<vmem>>, %arg4: memref<1x512xf32, #tpu.memory_space<vmem>>, %arg5: memref<128x512xbf16, #tpu.memory_space<vmem>>, %arg6: memref<128x32xf32, #tpu.memory_space<vmem>>, %arg7: memref<1x32xf32, #tpu.memory_space<vmem>>, %arg8: memref<32x8xf32, #tpu.memory_space<vmem>>, %arg9: memref<1x8xf32, #tpu.memory_space<vmem>>, %arg10: memref<8x8xf32, #tpu.memory_space<vmem>>, %arg11: memref<8x128xf32, #tpu.memory_space<vmem>>, %arg12: memref<8x128xf32, #tpu.memory_space<vmem>>, %arg13: memref<32x512xf32, #tpu.memory_space<vmem>>) attributes {dimension_semantics = [#tpu.dimension_semantics<parallel>, #tpu.dimension_semantics<arbitrary>], iteration_bounds = array<i64: 1, 3>, scalar_prefetch = 0 : i64, scratch_operands = 3 : i64, tpu.core_type = #tpu.core_type<tc>, window_params = [{transform_indices = @transform_0, window_bounds = array<i64: 1, 32, 16>}, {pipeline_mode = #tpu.pipeline_mode<synchronous>, transform_indices = @transform_1, window_bounds = array<i64: 16, 512>}, {pipeline_mode = #tpu.pipeline_mode<synchronous>, transform_indices = @transform_2, window_bounds = array<i64: 1, 512>}, {pipeline_mode = #tpu.pipeline_mode<synchronous>, transform_indices = @transform_3, window_bounds = array<i64: 128, 512>}, {pipeline_mode = #tpu.pipeline_mode<synchronous>, transform_indices = @transform_4, window_bounds = array<i64: 128, 32>}, {pipeline_mode = #tpu.pipeline_mode<synchronous>, transform_indices = @transform_5, window_bounds = array<i64: 1, 32>}, {pipeline_mode = #tpu.pipeline_mode<synchronous>, transform_indices = @transform_6, window_bounds = array<i64: 32, 8>}, {pipeline_mode = #tpu.pipeline_mode<synchronous>, transform_indices = @transform_7, window_bounds = array<i64: 1, 8>}, {transform_indices = @transform_8, window_bounds = array<i64: 8, 8>}]} {
    %c0_i32 = arith.constant 0 : i32
    %0 = arith.cmpi eq, %arg1, %c0_i32 : i32
    %1 = arith.extui %0 : i1 to i32
    %c0_i32_0 = arith.constant 0 : i32
    %2 = arith.cmpi ne, %1, %c0_i32_0 : i32
    scf.if %2 {
      %cst_58 = arith.constant 0.000000e+00 : f32
      %170 = vector.broadcast %cst_58 : f32 to vector<8x128xf32>
      %c0_59 = arith.constant 0 : index
      %c0_60 = arith.constant 0 : index
      %171 = vector.load %arg11[%c0_59, %c0_60] : memref<8x128xf32, #tpu.memory_space<vmem>>, vector<8x128xf32>
      tpu.vector_store %arg11[%c0_59, %c0_60], %170 {strides = array<i32>} : memref<8x128xf32, #tpu.memory_space<vmem>>, vector<8x128xf32>,
      %cst_61 = arith.constant 0.000000e+00 : f32
      %172 = vector.broadcast %cst_61 : f32 to vector<8x128xf32>
      %c0_62 = arith.constant 0 : index
      %c0_63 = arith.constant 0 : index
      %173 = vector.load %arg12[%c0_62, %c0_63] : memref<8x128xf32, #tpu.memory_space<vmem>>, vector<8x128xf32>
      tpu.vector_store %arg12[%c0_62, %c0_63], %172 {strides = array<i32>} : memref<8x128xf32, #tpu.memory_space<vmem>>, vector<8x128xf32>,
    } else {
    }
    %c0 = arith.constant 0 : index
    %c0_1 = arith.constant 0 : index
    %c0_2 = arith.constant 0 : index
    %3 = vector.load %arg2[%c0, %c0_1, %c0_2] : memref<1x32x16xbf16, #tpu.memory_space<vmem>>, vector<1x32x16xbf16>
    %4 = vector.shape_cast %3 : vector<1x32x16xbf16> to vector<32x16xbf16>
    %c0_3 = arith.constant 0 : index
    %c0_4 = arith.constant 0 : index
    %5 = vector.load %arg3[%c0_3, %c0_4] : memref<16x512xbf16, #tpu.memory_space<vmem>>, vector<16x512xbf16>
    %cst = arith.constant dense<0.000000e+00> : vector<32x512xf32>
    %6 = tpu.matmul %4, %5, %cst {dimension_numbers = #tpu.dot_dimension_numbers<[1], [0], [0], [1], [0, 0, 1, 1], [], []>} : vector<32x16xbf16>, vector<16x512xbf16>, vector<32x512xf32> -> vector<32x512xf32>
    %c0_5 = arith.constant 0 : index
    %c0_6 = arith.constant 0 : index
    %7 = vector.load %arg4[%c0_5, %c0_6] : memref<1x512xf32, #tpu.memory_space<vmem>>, vector<1x512xf32>
    %8 = vector.broadcast %7 : vector<1x512xf32> to vector<32x512xf32>
    %9 = arith.addf %6, %8 : vector<32x512xf32>
    %c0_7 = arith.constant 0 : index
    %c0_8 = arith.constant 0 : index
    %10 = vector.load %arg13[%c0_7, %c0_8] : memref<32x512xf32, #tpu.memory_space<vmem>>, vector<32x512xf32>
    tpu.vector_store %arg13[%c0_7, %c0_8], %9 {strides = array<i32>} : memref<32x512xf32, #tpu.memory_space<vmem>>, vector<32x512xf32>,
    %c0_9 = arith.constant 0 : index
    %c0_10 = arith.constant 0 : index
    %11 = vector.load %arg11[%c0_9, %c0_10] : memref<8x128xf32, #tpu.memory_space<vmem>>, vector<8x128xf32>
    %c0_11 = arith.constant 0 : index
    %c0_12 = arith.constant 0 : index
    %12 = vector.load %arg12[%c0_11, %c0_12] : memref<8x128xf32, #tpu.memory_space<vmem>>, vector<8x128xf32>
    %c0_i32_13 = arith.constant 0 : i32
    %c8_i32 = arith.constant 8 : i32
    %13 = arith.muli %c0_i32_13, %c8_i32 : i32
    %14 = tpu.assume_multiple %13, 8 : i32
    %15 = arith.index_cast %14 : i32 to index
    %c0_14 = arith.constant 0 : index
    %16 = vector.load %arg13[%15, %c0_14] : memref<32x512xf32, #tpu.memory_space<vmem>>, vector<8x512xf32>
    %17 = arith.truncf %11 : vector<8x128xf32> to vector<8x128xbf16>
    %c0_15 = arith.constant 0 : index
    %c0_16 = arith.constant 0 : index
    %18 = vector.load %arg5[%c0_15, %c0_16] : memref<128x512xbf16, #tpu.memory_space<vmem>>, vector<128x512xbf16>
    %cst_17 = arith.constant dense<0.000000e+00> : vector<8x512xf32>
    %19 = tpu.matmul %17, %18, %cst_17 {dimension_numbers = #tpu.dot_dimension_numbers<[1], [0], [0], [1], [0, 0, 1, 1], [], []>} : vector<8x128xbf16>, vector<128x512xbf16>, vector<8x512xf32> -> vector<8x512xf32>
    %20 = arith.addf %16, %19 : vector<8x512xf32>
    %21 = vector.extract_strided_slice %20 {offsets = [0, 0], sizes = [8, 128], strides = [1, 1]} : vector<8x512xf32> to vector<8x128xf32>
    %22 = arith.negf %21 : vector<8x128xf32>
    %23 = math.exp %22 : vector<8x128xf32>
    %cst_18 = arith.constant 1.000000e+00 : f32
    %24 = vector.broadcast %cst_18 : f32 to vector<8x128xf32>
    %25 = arith.addf %24, %23 : vector<8x128xf32>
    %26 = arith.divf %24, %25 : vector<8x128xf32>
    %27 = vector.extract_strided_slice %20 {offsets = [0, 128], sizes = [8, 128], strides = [1, 1]} : vector<8x512xf32> to vector<8x128xf32>
    %28 = arith.negf %27 : vector<8x128xf32>
    %29 = math.exp %28 : vector<8x128xf32>
    %cst_19 = arith.constant 1.000000e+00 : f32
    %30 = vector.broadcast %cst_19 : f32 to vector<8x128xf32>
    %31 = arith.addf %30, %29 : vector<8x128xf32>
    %32 = arith.divf %30, %31 : vector<8x128xf32>
    %33 = vector.extract_strided_slice %20 {offsets = [0, 256], sizes = [8, 128], strides = [1, 1]} : vector<8x512xf32> to vector<8x128xf32>
    %34 = math.tanh %33 : vector<8x128xf32>
    %35 = vector.extract_strided_slice %20 {offsets = [0, 384], sizes = [8, 128], strides = [1, 1]} : vector<8x512xf32> to vector<8x128xf32>
    %36 = arith.negf %35 : vector<8x128xf32>
    %37 = math.exp %36 : vector<8x128xf32>
    %cst_20 = arith.constant 1.000000e+00 : f32
    %38 = vector.broadcast %cst_20 : f32 to vector<8x128xf32>
    %39 = arith.addf %38, %37 : vector<8x128xf32>
    %40 = arith.divf %38, %39 : vector<8x128xf32>
    %41 = arith.mulf %32, %12 : vector<8x128xf32>
    %42 = arith.mulf %26, %34 : vector<8x128xf32>
    %43 = arith.addf %41, %42 : vector<8x128xf32>
    %44 = math.tanh %43 : vector<8x128xf32>
    %45 = arith.mulf %40, %44 : vector<8x128xf32>
    %c4_i32 = arith.constant 4 : i32
    %46 = arith.muli %arg1, %c4_i32 : i32
    %47 = arith.addi %46, %c0_i32_13 : i32
    %c10_i32 = arith.constant 10 : i32
    %48 = arith.cmpi slt, %47, %c10_i32 : i32
    %49 = arith.select %48, %45, %11 : vector<8x128xf32>
    %50 = arith.select %48, %43, %12 : vector<8x128xf32>
    %c1_i32 = arith.constant 1 : i32
    %c8_i32_21 = arith.constant 8 : i32
    %51 = arith.muli %c1_i32, %c8_i32_21 : i32
    %52 = tpu.assume_multiple %51, 8 : i32
    %53 = arith.index_cast %52 : i32 to index
    %c0_22 = arith.constant 0 : index
    %54 = vector.load %arg13[%53, %c0_22] : memref<32x512xf32, #tpu.memory_space<vmem>>, vector<8x512xf32>
    %55 = arith.truncf %49 : vector<8x128xf32> to vector<8x128xbf16>
    %c0_23 = arith.constant 0 : index
    %c0_24 = arith.constant 0 : index
    %56 = vector.load %arg5[%c0_23, %c0_24] : memref<128x512xbf16, #tpu.memory_space<vmem>>, vector<128x512xbf16>
    %cst_25 = arith.constant dense<0.000000e+00> : vector<8x512xf32>
    %57 = tpu.matmul %55, %56, %cst_25 {dimension_numbers = #tpu.dot_dimension_numbers<[1], [0], [0], [1], [0, 0, 1, 1], [], []>} : vector<8x128xbf16>, vector<128x512xbf16>, vector<8x512xf32> -> vector<8x512xf32>
    %58 = arith.addf %54, %57 : vector<8x512xf32>
    %59 = vector.extract_strided_slice %58 {offsets = [0, 0], sizes = [8, 128], strides = [1, 1]} : vector<8x512xf32> to vector<8x128xf32>
    %60 = arith.negf %59 : vector<8x128xf32>
    %61 = math.exp %60 : vector<8x128xf32>
    %cst_26 = arith.constant 1.000000e+00 : f32
    %62 = vector.broadcast %cst_26 : f32 to vector<8x128xf32>
    %63 = arith.addf %62, %61 : vector<8x128xf32>
    %64 = arith.divf %62, %63 : vector<8x128xf32>
    %65 = vector.extract_strided_slice %58 {offsets = [0, 128], sizes = [8, 128], strides = [1, 1]} : vector<8x512xf32> to vector<8x128xf32>
    %66 = arith.negf %65 : vector<8x128xf32>
    %67 = math.exp %66 : vector<8x128xf32>
    %cst_27 = arith.constant 1.000000e+00 : f32
    %68 = vector.broadcast %cst_27 : f32 to vector<8x128xf32>
    %69 = arith.addf %68, %67 : vector<8x128xf32>
    %70 = arith.divf %68, %69 : vector<8x128xf32>
    %71 = vector.extract_strided_slice %58 {offsets = [0, 256], sizes = [8, 128], strides = [1, 1]} : vector<8x512xf32> to vector<8x128xf32>
    %72 = math.tanh %71 : vector<8x128xf32>
    %73 = vector.extract_strided_slice %58 {offsets = [0, 384], sizes = [8, 128], strides = [1, 1]} : vector<8x512xf32> to vector<8x128xf32>
    %74 = arith.negf %73 : vector<8x128xf32>
    %75 = math.exp %74 : vector<8x128xf32>
    %cst_28 = arith.constant 1.000000e+00 : f32
    %76 = vector.broadcast %cst_28 : f32 to vector<8x128xf32>
    %77 = arith.addf %76, %75 : vector<8x128xf32>
    %78 = arith.divf %76, %77 : vector<8x128xf32>
    %79 = arith.mulf %70, %50 : vector<8x128xf32>
    %80 = arith.mulf %64, %72 : vector<8x128xf32>
    %81 = arith.addf %79, %80 : vector<8x128xf32>
    %82 = math.tanh %81 : vector<8x128xf32>
    %83 = arith.mulf %78, %82 : vector<8x128xf32>
    %c4_i32_29 = arith.constant 4 : i32
    %84 = arith.muli %arg1, %c4_i32_29 : i32
    %85 = arith.addi %84, %c1_i32 : i32
    %c10_i32_30 = arith.constant 10 : i32
    %86 = arith.cmpi slt, %85, %c10_i32_30 : i32
    %87 = arith.select %86, %83, %49 : vector<8x128xf32>
    %88 = arith.select %86, %81, %50 : vector<8x128xf32>
    %c2_i32 = arith.constant 2 : i32
    %c8_i32_31 = arith.constant 8 : i32
    %89 = arith.muli %c2_i32, %c8_i32_31 : i32
    %90 = tpu.assume_multiple %89, 8 : i32
    %91 = arith.index_cast %90 : i32 to index
    %c0_32 = arith.constant 0 : index
    %92 = vector.load %arg13[%91, %c0_32] : memref<32x512xf32, #tpu.memory_space<vmem>>, vector<8x512xf32>
    %93 = arith.truncf %87 : vector<8x128xf32> to vector<8x128xbf16>
    %c0_33 = arith.constant 0 : index
    %c0_34 = arith.constant 0 : index
    %94 = vector.load %arg5[%c0_33, %c0_34] : memref<128x512xbf16, #tpu.memory_space<vmem>>, vector<128x512xbf16>
    %cst_35 = arith.constant dense<0.000000e+00> : vector<8x512xf32>
    %95 = tpu.matmul %93, %94, %cst_35 {dimension_numbers = #tpu.dot_dimension_numbers<[1], [0], [0], [1], [0, 0, 1, 1], [], []>} : vector<8x128xbf16>, vector<128x512xbf16>, vector<8x512xf32> -> vector<8x512xf32>
    %96 = arith.addf %92, %95 : vector<8x512xf32>
    %97 = vector.extract_strided_slice %96 {offsets = [0, 0], sizes = [8, 128], strides = [1, 1]} : vector<8x512xf32> to vector<8x128xf32>
    %98 = arith.negf %97 : vector<8x128xf32>
    %99 = math.exp %98 : vector<8x128xf32>
    %cst_36 = arith.constant 1.000000e+00 : f32
    %100 = vector.broadcast %cst_36 : f32 to vector<8x128xf32>
    %101 = arith.addf %100, %99 : vector<8x128xf32>
    %102 = arith.divf %100, %101 : vector<8x128xf32>
    %103 = vector.extract_strided_slice %96 {offsets = [0, 128], sizes = [8, 128], strides = [1, 1]} : vector<8x512xf32> to vector<8x128xf32>
    %104 = arith.negf %103 : vector<8x128xf32>
    %105 = math.exp %104 : vector<8x128xf32>
    %cst_37 = arith.constant 1.000000e+00 : f32
    %106 = vector.broadcast %cst_37 : f32 to vector<8x128xf32>
    %107 = arith.addf %106, %105 : vector<8x128xf32>
    %108 = arith.divf %106, %107 : vector<8x128xf32>
    %109 = vector.extract_strided_slice %96 {offsets = [0, 256], sizes = [8, 128], strides = [1, 1]} : vector<8x512xf32> to vector<8x128xf32>
    %110 = math.tanh %109 : vector<8x128xf32>
    %111 = vector.extract_strided_slice %96 {offsets = [0, 384], sizes = [8, 128], strides = [1, 1]} : vector<8x512xf32> to vector<8x128xf32>
    %112 = arith.negf %111 : vector<8x128xf32>
    %113 = math.exp %112 : vector<8x128xf32>
    %cst_38 = arith.constant 1.000000e+00 : f32
    %114 = vector.broadcast %cst_38 : f32 to vector<8x128xf32>
    %115 = arith.addf %114, %113 : vector<8x128xf32>
    %116 = arith.divf %114, %115 : vector<8x128xf32>
    %117 = arith.mulf %108, %88 : vector<8x128xf32>
    %118 = arith.mulf %102, %110 : vector<8x128xf32>
    %119 = arith.addf %117, %118 : vector<8x128xf32>
    %120 = math.tanh %119 : vector<8x128xf32>
    %121 = arith.mulf %116, %120 : vector<8x128xf32>
    %c4_i32_39 = arith.constant 4 : i32
    %122 = arith.muli %arg1, %c4_i32_39 : i32
    %123 = arith.addi %122, %c2_i32 : i32
    %c10_i32_40 = arith.constant 10 : i32
    %124 = arith.cmpi slt, %123, %c10_i32_40 : i32
    %125 = arith.select %124, %121, %87 : vector<8x128xf32>
    %126 = arith.select %124, %119, %88 : vector<8x128xf32>
    %c3_i32 = arith.constant 3 : i32
    %c8_i32_41 = arith.constant 8 : i32
    %127 = arith.muli %c3_i32, %c8_i32_41 : i32
    %128 = tpu.assume_multiple %127, 8 : i32
    %129 = arith.index_cast %128 : i32 to index
    %c0_42 = arith.constant 0 : index
    %130 = vector.load %arg13[%129, %c0_42] : memref<32x512xf32, #tpu.memory_space<vmem>>, vector<8x512xf32>
    %131 = arith.truncf %125 : vector<8x128xf32> to vector<8x128xbf16>
    %c0_43 = arith.constant 0 : index
    %c0_44 = arith.constant 0 : index
    %132 = vector.load %arg5[%c0_43, %c0_44] : memref<128x512xbf16, #tpu.memory_space<vmem>>, vector<128x512xbf16>
    %cst_45 = arith.constant dense<0.000000e+00> : vector<8x512xf32>
    %133 = tpu.matmul %131, %132, %cst_45 {dimension_numbers = #tpu.dot_dimension_numbers<[1], [0], [0], [1], [0, 0, 1, 1], [], []>} : vector<8x128xbf16>, vector<128x512xbf16>, vector<8x512xf32> -> vector<8x512xf32>
    %134 = arith.addf %130, %133 : vector<8x512xf32>
    %135 = vector.extract_strided_slice %134 {offsets = [0, 0], sizes = [8, 128], strides = [1, 1]} : vector<8x512xf32> to vector<8x128xf32>
    %136 = arith.negf %135 : vector<8x128xf32>
    %137 = math.exp %136 : vector<8x128xf32>
    %cst_46 = arith.constant 1.000000e+00 : f32
    %138 = vector.broadcast %cst_46 : f32 to vector<8x128xf32>
    %139 = arith.addf %138, %137 : vector<8x128xf32>
    %140 = arith.divf %138, %139 : vector<8x128xf32>
    %141 = vector.extract_strided_slice %134 {offsets = [0, 128], sizes = [8, 128], strides = [1, 1]} : vector<8x512xf32> to vector<8x128xf32>
    %142 = arith.negf %141 : vector<8x128xf32>
    %143 = math.exp %142 : vector<8x128xf32>
    %cst_47 = arith.constant 1.000000e+00 : f32
    %144 = vector.broadcast %cst_47 : f32 to vector<8x128xf32>
    %145 = arith.addf %144, %143 : vector<8x128xf32>
    %146 = arith.divf %144, %145 : vector<8x128xf32>
    %147 = vector.extract_strided_slice %134 {offsets = [0, 256], sizes = [8, 128], strides = [1, 1]} : vector<8x512xf32> to vector<8x128xf32>
    %148 = math.tanh %147 : vector<8x128xf32>
    %149 = vector.extract_strided_slice %134 {offsets = [0, 384], sizes = [8, 128], strides = [1, 1]} : vector<8x512xf32> to vector<8x128xf32>
    %150 = arith.negf %149 : vector<8x128xf32>
    %151 = math.exp %150 : vector<8x128xf32>
    %cst_48 = arith.constant 1.000000e+00 : f32
    %152 = vector.broadcast %cst_48 : f32 to vector<8x128xf32>
    %153 = arith.addf %152, %151 : vector<8x128xf32>
    %154 = arith.divf %152, %153 : vector<8x128xf32>
    %155 = arith.mulf %146, %126 : vector<8x128xf32>
    %156 = arith.mulf %140, %148 : vector<8x128xf32>
    %157 = arith.addf %155, %156 : vector<8x128xf32>
    %158 = math.tanh %157 : vector<8x128xf32>
    %159 = arith.mulf %154, %158 : vector<8x128xf32>
    %c4_i32_49 = arith.constant 4 : i32
    %160 = arith.muli %arg1, %c4_i32_49 : i32
    %161 = arith.addi %160, %c3_i32 : i32
    %c10_i32_50 = arith.constant 10 : i32
    %162 = arith.cmpi slt, %161, %c10_i32_50 : i32
    %163 = arith.select %162, %159, %125 : vector<8x128xf32>
    %164 = arith.select %162, %157, %126 : vector<8x128xf32>
    %c4_i32_51 = arith.constant 4 : i32
    %c0_52 = arith.constant 0 : index
    %c0_53 = arith.constant 0 : index
    %165 = vector.load %arg11[%c0_52, %c0_53] : memref<8x128xf32, #tpu.memory_space<vmem>>, vector<8x128xf32>
    tpu.vector_store %arg11[%c0_52, %c0_53], %163 {strides = array<i32>} : memref<8x128xf32, #tpu.memory_space<vmem>>, vector<8x128xf32>,
    %c0_54 = arith.constant 0 : index
    %c0_55 = arith.constant 0 : index
    %166 = vector.load %arg12[%c0_54, %c0_55] : memref<8x128xf32, #tpu.memory_space<vmem>>, vector<8x128xf32>
    tpu.vector_store %arg12[%c0_54, %c0_55], %164 {strides = array<i32>} : memref<8x128xf32, #tpu.memory_space<vmem>>, vector<8x128xf32>,
    %c2_i32_56 = arith.constant 2 : i32
    %167 = arith.cmpi eq, %arg1, %c2_i32_56 : i32
    %168 = arith.extui %167 : i1 to i32
    %c0_i32_57 = arith.constant 0 : i32
    %169 = arith.cmpi ne, %168, %c0_i32_57 : i32
    scf.if %169 {
      %c0_58 = arith.constant 0 : index
      %c0_59 = arith.constant 0 : index
      %170 = vector.load %arg6[%c0_58, %c0_59] : memref<128x32xf32, #tpu.memory_space<vmem>>, vector<128x32xf32>
      %cst_60 = arith.constant dense<0.000000e+00> : vector<8x32xf32>
      %171 = tpu.matmul %163, %170, %cst_60 {dimension_numbers = #tpu.dot_dimension_numbers<[1], [0], [0], [1], [0, 0, 1, 1], [], []>} : vector<8x128xf32>, vector<128x32xf32>, vector<8x32xf32> -> vector<8x32xf32>
      %c0_61 = arith.constant 0 : index
      %c0_62 = arith.constant 0 : index
      %172 = vector.load %arg7[%c0_61, %c0_62] : memref<1x32xf32, #tpu.memory_space<vmem>>, vector<1x32xf32>
      %173 = vector.broadcast %172 : vector<1x32xf32> to vector<8x32xf32>
      %174 = arith.addf %171, %173 : vector<8x32xf32>
      %cst_63 = arith.constant 0.000000e+00 : f32
      %175 = vector.broadcast %cst_63 : f32 to vector<8x32xf32>
      %176 = arith.maximumf %174, %175 : vector<8x32xf32>
      %c0_64 = arith.constant 0 : index
      %c0_65 = arith.constant 0 : index
      %177 = vector.load %arg8[%c0_64, %c0_65] : memref<32x8xf32, #tpu.memory_space<vmem>>, vector<32x8xf32>
      %cst_66 = arith.constant dense<0.000000e+00> : vector<8x8xf32>
      %178 = tpu.matmul %176, %177, %cst_66 {dimension_numbers = #tpu.dot_dimension_numbers<[1], [0], [0], [1], [0, 0, 1, 1], [], []>} : vector<8x32xf32>, vector<32x8xf32>, vector<8x8xf32> -> vector<8x8xf32>
      %c0_67 = arith.constant 0 : index
      %c0_68 = arith.constant 0 : index
      %179 = vector.load %arg9[%c0_67, %c0_68] : memref<1x8xf32, #tpu.memory_space<vmem>>, vector<1x8xf32>
      %180 = vector.broadcast %179 : vector<1x8xf32> to vector<8x8xf32>
      %181 = arith.addf %178, %180 : vector<8x8xf32>
      %c0_69 = arith.constant 0 : index
      %c0_70 = arith.constant 0 : index
      %182 = vector.load %arg10[%c0_69, %c0_70] : memref<8x8xf32, #tpu.memory_space<vmem>>, vector<8x8xf32>
      tpu.vector_store %arg10[%c0_69, %c0_70], %181 {strides = array<i32>} : memref<8x8xf32, #tpu.memory_space<vmem>>, vector<8x8xf32>,
    } else {
    }
    return
  }
  func.func @transform_0(%arg0: i32, %arg1: i32) -> (i32, i32, i32) {
    %c0_i32 = arith.constant 0 : i32
    %c0_i32_0 = arith.constant 0 : i32
    return %arg0, %arg1, %c0_i32 : i32, i32, i32
  }
  func.func @transform_1(%arg0: i32, %arg1: i32) -> (i32, i32) {
    %c0_i32 = arith.constant 0 : i32
    %c0_i32_0 = arith.constant 0 : i32
    %c0_i32_1 = arith.constant 0 : i32
    return %c0_i32, %c0_i32_0 : i32, i32
  }
  func.func @transform_2(%arg0: i32, %arg1: i32) -> (i32, i32) {
    %c0_i32 = arith.constant 0 : i32
    %c0_i32_0 = arith.constant 0 : i32
    %c0_i32_1 = arith.constant 0 : i32
    return %c0_i32, %c0_i32_0 : i32, i32
  }
  func.func @transform_3(%arg0: i32, %arg1: i32) -> (i32, i32) {
    %c0_i32 = arith.constant 0 : i32
    %c0_i32_0 = arith.constant 0 : i32
    %c0_i32_1 = arith.constant 0 : i32
    return %c0_i32, %c0_i32_0 : i32, i32
  }
  func.func @transform_4(%arg0: i32, %arg1: i32) -> (i32, i32) {
    %c0_i32 = arith.constant 0 : i32
    %c0_i32_0 = arith.constant 0 : i32
    %c0_i32_1 = arith.constant 0 : i32
    return %c0_i32, %c0_i32_0 : i32, i32
  }
  func.func @transform_5(%arg0: i32, %arg1: i32) -> (i32, i32) {
    %c0_i32 = arith.constant 0 : i32
    %c0_i32_0 = arith.constant 0 : i32
    %c0_i32_1 = arith.constant 0 : i32
    return %c0_i32, %c0_i32_0 : i32, i32
  }
  func.func @transform_6(%arg0: i32, %arg1: i32) -> (i32, i32) {
    %c0_i32 = arith.constant 0 : i32
    %c0_i32_0 = arith.constant 0 : i32
    %c0_i32_1 = arith.constant 0 : i32
    return %c0_i32, %c0_i32_0 : i32, i32
  }
  func.func @transform_7(%arg0: i32, %arg1: i32) -> (i32, i32) {
    %c0_i32 = arith.constant 0 : i32
    %c0_i32_0 = arith.constant 0 : i32
    %c0_i32_1 = arith.constant 0 : i32
    return %c0_i32, %c0_i32_0 : i32, i32
  }
  func.func @transform_8(%arg0: i32, %arg1: i32) -> (i32, i32) {
    %c0_i32 = arith.constant 0 : i32
    %c0_i32_0 = arith.constant 0 : i32
    return %arg0, %c0_i32 : i32, i32
  }
}

</mosaic_0001>

<bundles_post_ra>
// kernel: tpu_custom_call.1
= control target key start
LH: loop header
LB: loop body
LE: loop exit
PB: predicated region body
PF: predicated region fallthrough
CT: control target
= control target key end

     0   :  { %13 = vsyncpa [#allocation6], 0  ;;  %s2546_s0 = inlined_call_operand.vmem [shape: bf16[1,96,16], index: 0, kind: input, shape index: {}]   ;;  %s2547_s1 = inlined_call_operand.hbm [shape: bf16[16,512], index: 1, kind: input, shape index: {}]   ;;  %s2548_s2 = inlined_call_operand.hbm [shape: f32[1,512], index: 2, kind: input, shape index: {}]   ;;  %s2549_s3 = inlined_call_operand.vmem [shape: bf16[128,512], index: 3, kind: input, shape index: {}]   ;;  %s2550_s4 = inlined_call_operand.vmem [shape: f32[128,32], index: 4, kind: input, shape index: {}]   ;;  %s2551_s5 = inlined_call_operand.vmem [shape: f32[1,32], index: 5, kind: input, shape index: {}]   ;;  %s2552_s6 = inlined_call_operand.vmem [shape: f32[32,8], index: 6, kind: input, shape index: {}]   ;;  %s2553_s7 = inlined_call_operand.vmem [shape: f32[1,8], index: 7, kind: input, shape index: {}]   ;;  %s2554_s8 = inlined_call_operand.hbm [shape: f32[8,8], index: 8, kind: output, shape index: {}]  }
   0x1   :  { %14 = vsyncpa [#allocation9], 0 }
   0x2   :  { %15 = vsyncpa [#allocation7], 0  ;;  %s2006_s27 = smov 0   ;;  %s2008_s28 = smov 0  }
   0x3   :  { %s2010_s29 = smov 0  }
   0x4 LB: > { %s1520_s30 = sadd.s32 4294967295, %s1950_s29   ;;  %s30_s9 = sadd.s32 1, %s1946_s28  ;;  %s1950_s29 = sphi %s2010_s29, %s21_s29   ;;  %s1946_s28 = sphi %s2008_s28, %s2575_s28   ;;  %s1942_s27 = sphi %s2006_s27, %s2574_s27  }
   0x5   : > { %p31_p0 = scmp.ge.s32.totalorder %s30_s9, 3  ;;  %p1521_p1 = scmp.ge.s32.totalorder %s1950_s29, 1 }
   0x6   : > { %p239_p2 = scmp.lt.s32.totalorder %s1950_s29, 4  ;;  %p2033_p4 = scmp.eq.s32.totalorder %s1520_s30, 0 }
   0x7   : > { %s2577_s9 = smov (%p31_p0, %s30_s9), 0  ;;  %s1952_s12 = smov [#allocation5]  }
   0x8   : > { %p2027_p3 = pnand %p1521_p1, %p239_p2  ;;  %s251_s13 = sshll.u32 %s1952_s12, 4  ;;  %s252_s13 = int_to_ptr.vmem [resolvable:$true] %s251_s13 }
   0x9   : > { %s1953_s15 = smov [#allocation8]   ;;  %s1851_s17 = scalar_lea.vmem %s252_s13, 512 }
   0xa   : > { %p1674_p5 = pneg %p2027_p3  ;;  %s265_s16 = sshll.u32 %s1953_s15, 4  ;;  %s266_s16 = int_to_ptr.vmem [resolvable:$true] %s265_s16 }
   0xb   : > { %p1852_p8 = scmp.ne.s32.totalorder %s252_s13, %s1851_s17  ;;  %p1859_p11 = scmp.lt.s32.totalorder %s252_s13, %s252_s13 }
   0xc   : > { %p2041_p6 = pnand %p2033_p4, %p1674_p5  ;;  %p1860_p12 = scmp.lt.s32.totalorder %s1851_s17, %s1851_s17 }
   0xe   : > { %p1842_p7 = pneg %p2041_p6  ;;  %p1861_p13 = por %p1860_p12, %p1859_p11 }
  0x10   : > { %p1854_p9 = pnand %p1852_p8, %p1842_p7 }
  0x12   : > { %p1855_p10 = pneg %p1854_p9 }
  0x14   : > { %p1862_p0 = pnand %p1861_p13, %p1855_p10 }
  0x16   : > { %1865 = shalt.err (!%p1862_p0)
}
  0x17   : > { %s1954_s18 = smov 256   ;;  %s1955_s19 = smov 16  }
  0x18   : > { %1677 = dma.hbm_to_vmem [thread:$0]  (!%p2041_p6), %s2547_s1, 512, %s252_s13, [#allocation6], %s1954_s18, %s1954_s18, %s1955_s19  }
  0x19   : > { %s1877_s22 = scalar_lea.vmem %s266_s16, 64  ;;  %p1885_p8 = scmp.lt.s32.totalorder %s266_s16, %s266_s16 }
  0x1a   : > { %p1878_p1 = scmp.ne.s32.totalorder %s266_s16, %s1877_s22  ;;  %p1886_p9 = scmp.lt.s32.totalorder %s1877_s22, %s1877_s22 }
  0x1c   : > { %p1880_p2 = pnand %p1878_p1, %p1842_p7  ;;  %p1887_p11 = por %p1886_p9, %p1885_p8 }
  0x1e   : > { %p1881_p5 = pneg %p1880_p2 }
  0x20   : > { %p1888_p10 = pnand %p1887_p11, %p1881_p5 }
  0x22   : > { %1891 = shalt.err (!%p1888_p10)
}
  0x23   : > { %1680 = dma.hbm_to_vmem [thread:$0]  (!%p2041_p6), %s2548_s2, 64, %s266_s16, [#allocation9]  }
  0x24   : > { %306 = sbr.rel (%p2027_p3) target bundleno = 1539 (0x603), region = 52 }
  0x29   : > { %1929 = dma.done.wait (%p2033_p4), [#allocation6], 512  }
  0x2a   : > { %1931 = vsyncadd (%p2033_p4), [#allocation6], 4294966784 }
  0x2b   : > { %1933 = dma.done.wait (%p2033_p4), [#allocation9], 64  }
  0x2c   : > { %1935 = vsyncadd (%p2033_p4), [#allocation9], 4294967232  ;;  %s2074_s25 = sshll.u32 %s1942_s27, 2  ;;  %p1530_p3 = scmp.ne.s32.totalorder %s1942_s27, 0 }
  0x2d   : > { %p346_p6 = scmp.lt.s32.totalorder %s2074_s25, 11 }
  0x2e   : > { %357 = sbr.rel (%p1530_p3) target bundleno = 53 (0x35), region = 64 }
  0x2f   : > { %s347_s26 = scalar_select %p346_p6, %s2074_s25, 11 }
  0x31   : > { %s1529_s10 = sshll.u32 %s347_s26, 2 }
  0x32   : > { %s2081_s14 = scalar_lea.vmem %s2546_s0, %s1529_s10 }
  0x33   : > { %v1956_v0 = vmov 0.0  }
  0x34   : > { %358 = vst [vmem:[#allocation2] sm:$0xff] %v1956_v0  ;;  %359 = vst [vmem:[#allocation3] sm:$0xff] %v1956_v0 }
  0x35 PF: > { %v1720_v1 = vld [vmem:[#allocation5 + $0x4] ss:$16 sps:$4 sm:$0xff]   ;;  %v1722_v2 = vld [vmem:[#allocation5 + $0xc] ss:$16 sps:$4 sm:$0xff]   ;;  %v2555_v3 = vmov 0   ;;  %vm420_vm0 = vcmask 130048   ;;  %v370_v42 = vlaneseq }
  0x36   : > { %459 = vmatprep.mubr.bf16.mxu0 %v2555_v3  ;;  %512 = vmatprep.mubr.bf16.mxu1 %v2555_v3  ;;  %v1724_v4 = vld [vmem:[#allocation5] ss:$16 sps:$4 sm:$0xff]   ;;  %v1725_v5 = vld [vmem:[#allocation5 + $0x8] ss:$16 sps:$4 sm:$0xff]   ;;  %v2090_v7 = vld [vmem:[%s2549_s3 + $0xe4] ss:$16 sps:$4 sm:$0xff]  }
  0x37   : > { %441 = vmatprep.subr.bf16.mxu0 %v1720_v1  ;;  %494 = vmatprep.subr.bf16.mxu1 %v1722_v2  ;;  %v1726_v6 = vld [vmem:[%s2081_s14] sm:$0xff]   ;;  %v2095_v8 = vld [vmem:[%s2549_s3 + $0xec] ss:$16 sps:$4 sm:$0xff]   ;;  %v2106_v10 = vld [vmem:[%s2549_s3 + $0xe8] ss:$16 sps:$4 sm:$0xff]   ;;  %v371_v43 = vshrl.u32 %v370_v42, 7 }
  0x38   : > { %442 = vmatpush1.bf16.msra.mxu0 %v1724_v4  ;;  %495 = vmatpush1.bf16.msra.mxu1 %v1725_v5  ;;  %v2100_v9 = vld [vmem:[%s2549_s3 + $0xe0] ss:$16 sps:$4 sm:$0xff]   ;;  %v2113_v11 = vld [vmem:[%s2549_s3 + $0xc4] ss:$16 sps:$4 sm:$0xff]   ;;  %v2120_v12 = vld [vmem:[%s2549_s3 + $0xcc] ss:$16 sps:$4 sm:$0xff]  }
  0x39   : > { %751 = vmatprep.subr.bf16.mxu0 %v2090_v7  ;;  %792 = vmatprep.subr.bf16.mxu1 %v2095_v8  ;;  %v2125_v13 = vld [vmem:[%s2549_s3 + $0xc0] ss:$16 sps:$4 sm:$0xff]   ;;  %v2130_v14 = vld [vmem:[%s2549_s3 + $0xc8] ss:$16 sps:$4 sm:$0xff]   ;;  %v2137_v15 = vld [vmem:[%s2549_s3 + $0xa4] ss:$16 sps:$4 sm:$0xff]  }
  0x3a   : > { %v2143_v16 = vld [vmem:[%s2549_s3 + $0xac] ss:$16 sps:$4 sm:$0xff]   ;;  %v2151_v17 = vld [vmem:[%s2549_s3 + $0xa0] ss:$16 sps:$4 sm:$0xff]   ;;  %v2158_v18 = vld [vmem:[%s2549_s3 + $0xa8] ss:$16 sps:$4 sm:$0xff]  }
  0x3b   : > { %1537 = vmatmul.mubr.msk.bf16.vlgmr.msra.gmra.mxu0 %vm420_vm0, %v1726_v6  ;;  %1539 = vmatmul.mubr.msk.bf16.vlgmr.msra.gmra.mxu1 %vm420_vm0, %v1726_v6  ;;  %v2163_v19 = vld [vmem:[%s2549_s3 + $0x84] ss:$16 sps:$4 sm:$0xff]   ;;  %v2169_v20 = vld [vmem:[%s2549_s3 + $0x8c] ss:$16 sps:$4 sm:$0xff]   ;;  %v2175_v21 = vld [vmem:[%s2549_s3 + $0x80] ss:$16 sps:$4 sm:$0xff]  }
  0x3c   : > { %752 = vmatpush1.bf16.msra.mxu0 %v2100_v9  ;;  %793 = vmatpush1.bf16.msra.mxu1 %v2106_v10  ;;  %v2180_v22 = vld [vmem:[%s2549_s3 + $0x88] ss:$16 sps:$4 sm:$0xff]   ;;  %v2185_v23 = vld [vmem:[%s2549_s3 + $0x64] ss:$16 sps:$4 sm:$0xff]   ;;  %v2194_v25 = vld [vmem:[%s2549_s3 + $0x6c] ss:$16 sps:$4 sm:$0xff]  }
  0x3d   : > { %753 = vmatprep.subr.bf16.mxu0 %v2113_v11  ;;  %794 = vmatprep.subr.bf16.mxu1 %v2120_v12  ;;  %v1757_v24 = vld [vmem:[%s2081_s14 + $0x8] sm:$0xff]   ;;  %v2202_v26 = vld [vmem:[%s2549_s3 + $0x60] ss:$16 sps:$4 sm:$0xff]   ;;  %v2215_v28 = vld [vmem:[%s2549_s3 + $0x44] ss:$16 sps:$4 sm:$0xff]   ;;  %v380_v44 = vsub.s32 2, %v371_v43 }
  0x3e   : > { %469 = vmatprep.mubr.bf16.mxu0 %v2555_v3  ;;  %522 = vmatprep.mubr.bf16.mxu1 %v2555_v3  ;;  %v2207_v27 = vld [vmem:[%s2549_s3 + $0x68] ss:$16 sps:$4 sm:$0xff]   ;;  %v2221_v29 = vld [vmem:[%s2549_s3 + $0x4c] ss:$16 sps:$4 sm:$0xff]   ;;  %v2228_v30 = vld [vmem:[%s2549_s3 + $0x40] ss:$16 sps:$4 sm:$0xff]  }
  0x3f   : > { %v2235_v31 = vld [vmem:[%s2549_s3 + $0x48] ss:$16 sps:$4 sm:$0xff]   ;;  %v2240_v32 = vld [vmem:[%s2549_s3 + $0x24] ss:$16 sps:$4 sm:$0xff]   ;;  %v2246_v33 = vld [vmem:[%s2549_s3 + $0x2c] ss:$16 sps:$4 sm:$0xff]  }
  0x40   : > { %754 = vmatpush1.bf16.msra.mxu0 %v2125_v13  ;;  %795 = vmatpush1.bf16.msra.mxu1 %v2130_v14  ;;  %v2252_v34 = vld [vmem:[%s2549_s3 + $0x20] ss:$16 sps:$4 sm:$0xff]   ;;  %v2259_v35 = vld [vmem:[%s2549_s3 + $0x28] ss:$16 sps:$4 sm:$0xff]   ;;  %v2264_v36 = vld [vmem:[%s2549_s3 + $0x4] ss:$16 sps:$4 sm:$0xff]  }
  0x41   : > { %755 = vmatprep.subr.bf16.mxu0 %v2137_v15  ;;  %796 = vmatprep.subr.bf16.mxu1 %v2143_v16  ;;  %v2270_v37 = vld [vmem:[%s2549_s3 + $0xc] ss:$16 sps:$4 sm:$0xff]   ;;  %v2276_v38 = vld [vmem:[%s2549_s3] ss:$16 sps:$4 sm:$0xff]   ;;  %v2285_v40 = vld [vmem:[%s2549_s3 + $0x8] ss:$16 sps:$4 sm:$0xff]  }
  0x42   : > { %v2278_v39 = vld [vmem:[#allocation2] sm:$0xff]  ;;  %v372_v45 = vsub.s32 0, %v371_v43  ;;  %v368_v46 = vld [vmem:[#allocation8] sm:$0xf]  ;;  %v384_v48 = vsub.s32 3, %v371_v43  ;;  %v376_v49 = vsub.s32 1, %v371_v43 }
  0x43   : > { %1538 = vmatmul.mubr.msk.bf16.gmra.mxu0 %vm420_vm0, %v1757_v24  ;;  %1540 = vmatmul.mubr.msk.bf16.gmra.mxu1 %vm420_vm0, %v1757_v24  ;;  %v558_v41 = vpack.c.bf16 %v2278_v39, %v2278_v39  ;;  %v381_v52 = vrot.slane %v368_v46, %v380_v44  ;;  %p862_p4 = scmp.lt.s32.totalorder %s2074_s25, 10  ;;  %s986_s17 = sadd.s32 1, %s2074_s25 }
  0x44   : > { %756 = vmatpush1.bf16.msra.mxu0 %v2151_v17  ;;  %797 = vmatpush1.bf16.msra.mxu1 %v2158_v18  ;;  %v373_v53 = vrot.slane %v368_v46, %v372_v45  ;;  %v385_v56 = vrot.slane %v368_v46, %v384_v48  ;;  %v377_v57 = vrot.slane %v368_v46, %v376_v49  ;;  %p987_p7 = scmp.lt.s32.totalorder %s986_s17, 10  ;;  %s1111_s19 = sadd.s32 2, %s2074_s25 }
  0x45   : > { %757 = vmatprep.subr.bf16.mxu0 %v2163_v19  ;;  %798 = vmatprep.subr.bf16.mxu1 %v2169_v20  ;;  %s863_s16 = scalar_select %p862_p4, 1, 0 }
  0x46   : > { %783 = vmatprep.mubr.bf16.mxu0 %v2555_v3  ;;  %824 = vmatprep.mubr.bf16.mxu1 %v2555_v3  ;;  %s988_s18 = scalar_select %p987_p7, 1, 0 }
  0x47   : > { %p1112_p12 = scmp.lt.s32.totalorder %s1111_s19, 10  ;;  %s1236_s21 = sadd.s32 3, %s2074_s25 }
  0x48   : > { %758 = vmatpush1.bf16.msra.mxu0 %v2175_v21  ;;  %799 = vmatpush1.bf16.msra.mxu1 %v2180_v22  ;;  %p1237_p13 = scmp.lt.s32.totalorder %s1236_s21, 10  ;;  %p1586_p0 = scmp.ne.s32.totalorder %s1942_s27, 2 }
  0x49   : > { %759 = vmatprep.subr.bf16.mxu0 %v2185_v23  ;;  %800 = vmatprep.subr.bf16.mxu1 %v2194_v25  ;;  %s1113_s20 = scalar_select %p1112_p12, 1, 0 }
  0x4a   : > { %s1238_s22 = scalar_select %p1237_p13, 1, 0 }
  0x4c   : > { %760 = vmatpush1.bf16.msra.mxu0 %v2202_v26  ;;  %801 = vmatpush1.bf16.msra.mxu1 %v2207_v27 }
  0x4d   : > { %761 = vmatprep.subr.bf16.mxu0 %v2215_v28  ;;  %802 = vmatprep.subr.bf16.mxu1 %v2221_v29 }
  0x50   : > { %762 = vmatpush1.bf16.msra.mxu0 %v2228_v30  ;;  %803 = vmatpush1.bf16.msra.mxu1 %v2235_v31 }
  0x51   : > { %763 = vmatprep.subr.bf16.mxu0 %v2240_v32  ;;  %804 = vmatprep.subr.bf16.mxu1 %v2246_v33 }
  0x54   : > { %764 = vmatpush1.bf16.msra.mxu0 %v2252_v34  ;;  %805 = vmatpush1.bf16.msra.mxu1 %v2259_v35 }
  0x55   : > { %765 = vmatprep.subr.bf16.mxu0 %v2264_v36  ;;  %806 = vmatprep.subr.bf16.mxu1 %v2270_v37 }
  0x58   : > { %766 = vmatpush1.bf16.msra.mxu0 %v2276_v38  ;;  %807 = vmatpush1.bf16.msra.mxu1 %v2285_v40 }
  0x59   : > { %876 = vmatprep.subr.bf16.mxu0 %v2090_v7  ;;  %917 = vmatprep.subr.bf16.mxu1 %v2095_v8 }
  0x5b   : > { %784 = vmatmul.mubr.bf16.vlgmr.msra.gmra.mxu0 %v558_v41  ;;  %825 = vmatmul.mubr.bf16.vlgmr.msra.gmra.mxu1 %v558_v41 }
  0x5c   : > { %877 = vmatpush1.bf16.msra.mxu0 %v2100_v9  ;;  %918 = vmatpush1.bf16.msra.mxu1 %v2106_v10 }
  0x5d   : > { %878 = vmatprep.subr.bf16.mxu0 %v2113_v11  ;;  %919 = vmatprep.subr.bf16.mxu1 %v2120_v12 }
  0x5e   : > { %908 = vmatprep.mubr.bf16.mxu0 %v2555_v3  ;;  %949 = vmatprep.mubr.bf16.mxu1 %v2555_v3 }
  0x60   : > { %879 = vmatpush1.bf16.msra.mxu0 %v2125_v13  ;;  %920 = vmatpush1.bf16.msra.mxu1 %v2130_v14 }
  0x61   : > { %880 = vmatprep.subr.bf16.mxu0 %v2137_v15  ;;  %921 = vmatprep.subr.bf16.mxu1 %v2143_v16 }
  0x64   : > { %881 = vmatpush1.bf16.msra.mxu0 %v2151_v17  ;;  %922 = vmatpush1.bf16.msra.mxu1 %v2158_v18 }
  0x65   : > { %882 = vmatprep.subr.bf16.mxu0 %v2163_v19  ;;  %923 = vmatprep.subr.bf16.mxu1 %v2169_v20 }
  0x68   : > { %883 = vmatpush1.bf16.msra.mxu0 %v2175_v21  ;;  %924 = vmatpush1.bf16.msra.mxu1 %v2180_v22 }
  0x69   : > { %884 = vmatprep.subr.bf16.mxu0 %v2185_v23  ;;  %925 = vmatprep.subr.bf16.mxu1 %v2194_v25 }
  0x6c   : > { %885 = vmatpush1.bf16.msra.mxu0 %v2202_v26  ;;  %926 = vmatpush1.bf16.msra.mxu1 %v2207_v27 }
  0x6d   : > { %886 = vmatprep.subr.bf16.mxu0 %v2215_v28  ;;  %927 = vmatprep.subr.bf16.mxu1 %v2221_v29 }
  0x70   : > { %887 = vmatpush1.bf16.msra.mxu0 %v2228_v30  ;;  %928 = vmatpush1.bf16.msra.mxu1 %v2235_v31 }
  0x71   : > { %888 = vmatprep.subr.bf16.mxu0 %v2240_v32  ;;  %929 = vmatprep.subr.bf16.mxu1 %v2246_v33 }
  0x74   : > { %889 = vmatpush1.bf16.msra.mxu0 %v2252_v34  ;;  %930 = vmatpush1.bf16.msra.mxu1 %v2259_v35 }
  0x75   : > { %890 = vmatprep.subr.bf16.mxu0 %v2264_v36  ;;  %931 = vmatprep.subr.bf16.mxu1 %v2270_v37 }
  0x78   : > { %891 = vmatpush1.bf16.msra.mxu0 %v2276_v38  ;;  %932 = vmatpush1.bf16.msra.mxu1 %v2285_v40 }
  0x79   : > { %1001 = vmatprep.subr.bf16.mxu0 %v2090_v7  ;;  %1042 = vmatprep.subr.bf16.mxu1 %v2095_v8 }
  0xfb   : > { %v461_v47 = vpop.f32.mrf.mxu0  ;;  %v514_v50 = vpop.f32.mrf.mxu1 }
  0xfd   : > { %v463_v51 = vpop.f32.mrf.mxu0  ;;  %v516_v54 = vpop.f32.mrf.mxu1 }
  0xff   : > { %v465_v55 = vpop.f32.mrf.mxu0  ;;  %v518_v59 = vpop.f32.mrf.mxu1 }
 0x100   : > { %v2328_v58 = vadd.f32 %v465_v55, %v373_v53  ;;  %v2330_v61 = vadd.f32 %v518_v59, %v381_v52 }
 0x101   : > { %v467_v60 = vpop.f32.mrf.mxu0  ;;  %v520_v63 = vpop.f32.mrf.mxu1 }
 0x102   : > { %v2332_v62 = vadd.f32 %v467_v60, %v377_v57  ;;  %v2334_v0 = vadd.f32 %v520_v63, %v385_v56  ;;  %v462_v60 = vadd.f32 %v461_v47, %v373_v53 }
 0x103   : > { %v471_v1 = vpop.f32.mrf.mxu0  ;;  %v524_v2 = vpop.f32.mrf.mxu1 }
 0x104   : > { %v2336_v4 = vadd.f32 %v471_v1, %v373_v53  ;;  %v2338_v5 = vadd.f32 %v524_v2, %v381_v52  ;;  %v464_v1 = vadd.f32 %v463_v51, %v377_v57 }
 0x105   : > { %v473_v6 = vpop.f32.mrf.mxu0  ;;  %v526_v24 = vpop.f32.mrf.mxu1 }
 0x106   : > { %2560 = vst [vmem:[#allocation14_spill] sm:$0xff] %v2338_v5  ;;  %v2340_v41 = vadd.f32 %v473_v6, %v377_v57  ;;  %v2342_v42 = vadd.f32 %v526_v24, %v385_v56 }
 0x107   : > { %v475_v43 = vpop.f32.mrf.mxu0  ;;  %v528_v44 = vpop.f32.mrf.mxu1 }
 0x108   : > { %2561 = vst [vmem:[#allocation15_spill] sm:$0xff] %v2340_v41  ;;  %2562 = vst [vmem:[#allocation16_spill] sm:$0xff] %v2342_v42  ;;  %v2344_v45 = vadd.f32 %v475_v43, %v373_v53  ;;  %v2346_v46 = vadd.f32 %v528_v44, %v381_v52 }
 0x109   : > { %v477_v48 = vpop.f32.mrf.mxu0  ;;  %v530_v49 = vpop.f32.mrf.mxu1 }
 0x10a   : > { %2563 = vst [vmem:[#allocation17_spill] sm:$0xff] %v2346_v46  ;;  %v2348_v55 = vadd.f32 %v477_v48, %v377_v57  ;;  %v2350_v59 = vadd.f32 %v530_v49, %v385_v56 }
 0x10c   : > { %2564 = vst [vmem:[#allocation18_spill] sm:$0xff] %v2348_v55  ;;  %2565 = vst [vmem:[#allocation19_spill] sm:$0xff] %v2350_v59  ;;  %v517_v55 = vadd.f32 %v516_v54, %v385_v56  ;;  %v515_v59 = vadd.f32 %v514_v50, %v381_v52 }
 0x11b   : > { %v785_v63 = vpop.f32.mrf.mxu0  ;;  %v826_v6 = vpop.f32.mrf.mxu1 }
 0x11c   : > { %v833_v2 = vadd.f32 %v785_v63, %v462_v60  ;;  %v835_v51 = vadd.f32 %v826_v6, %v515_v59 }
 0x11d   : > { %v787_v3 = vpop.f32.mrf.mxu0  ;;  %v828_v42 = vpop.f32.mrf.mxu1 }
 0x11e   : > { %v1573_v24 = vmul.f32 -1.442695, %v833_v2  ;;  %v834_v5 = vadd.f32 %v787_v3, %v464_v1  ;;  %v836_v49 = vadd.f32 %v828_v42, %v517_v55  ;;  %v864_v1 = vstv %s863_s16 }
 0x11f   : > { %v789_v41 = vpop.f32.mrf.mxu0  ;;  %v830_v44 = vpop.f32.mrf.mxu1  ;;  %vm865_vm1 = vcmp.eq.s32.totalorder %v864_v1, 1 }
 0x120   : > { %1776 = vpow2.f32 %v1573_v24  ;;  %v1574_v43 = vmul.f32 -1.442695, %v834_v5  ;;  %v1575_v47 = vmul.f32 -1.442695, %v836_v49  ;;  %v2566_v44 = vmov 0  }
 0x121   : > { %v790_v46 = vpop.f32.mrf.mxu0  ;;  %v831_v48 = vpop.f32.mrf.mxu1 }
 0x122   : > { %1778 = vpow2.f32 %v1574_v43  ;;  %v550_v46 = vld [vmem:[#allocation3] sm:$0xff] }
 0x123   : > { %1780 = vpow2.f32 %v1575_v47 }
 0x12d   : > { %v1777_v53 = vpop.eup %1776 }
 0x12e   : > { %v840_v57 = vadd.f32 1.0, %v1777_v53 }
 0x12f   : > { %v1779_v60 = vpop.eup %1778 }
 0x130   : > { %1782 = vrcp.f32 %v840_v57  ;;  %v846_v3 = vadd.f32 1.0, %v1779_v60  ;;  %v1781_v5 = vpop.eup %1780 }
 0x131   : > { %1784 = vtanh.f32 %v835_v51  ;;  %v853_v56 = vadd.f32 1.0, %v1781_v5 }
 0x132   : > { %1786 = vrcp.f32 %v846_v3 }
 0x133   : > { %1788 = vrcp.f32 %v853_v56 }
 0x13d   : > { %v1783_v41 = vpop.eup %1782 }
 0x13e   : > { %v1785_v63 = vpop.eup %1784 }
 0x13f   : > { %v1787_v54 = vpop.eup %1786  ;;  %v857_v50 = vmul.f32 %v1785_v63, %v1783_v41 }
 0x140   : > { %v856_v52 = vmul.f32 %v1787_v54, %v550_v46  ;;  %v1789_v59 = vpop.eup %1788 }
 0x142   : > { %v858_v42 = vadd.f32 %v857_v50, %v856_v52 }
 0x144   : > { %1790 = vtanh.f32 %v858_v42  ;;  %v2353_v55 = vsel %vm865_vm1, %v858_v42, %v550_v46 }
 0x151   : > { %v1791_v2 = vpop.eup %1790 }
 0x152   : > { %v860_v6 = vmul.f32 %v1791_v2, %v1789_v59  ;;  %v989_v59 = vstv %s988_s18 }
 0x153   : > { %vm990_vm2 = vcmp.eq.s32.totalorder %v989_v59, 1  ;;  %v2572_v59 = vld [vmem:[#allocation17_spill] sm:$0xff] }
 0x154   : > { %v2356_v24 = vsel %vm865_vm1, %v860_v6, %v2278_v39 }
 0x155   : > { %v875_v43 = vpack.c.bf16 %v2356_v24, %v2356_v24 }
 0x157   : > { %909 = vmatmul.mubr.bf16.vlgmr.msra.gmra.mxu0 %v875_v43  ;;  %950 = vmatmul.mubr.bf16.vlgmr.msra.gmra.mxu1 %v875_v43 }
 0x158   : > { %1002 = vmatpush1.bf16.msra.mxu0 %v2100_v9  ;;  %1043 = vmatpush1.bf16.msra.mxu1 %v2106_v10 }
 0x159   : > { %1003 = vmatprep.subr.bf16.mxu0 %v2113_v11  ;;  %1044 = vmatprep.subr.bf16.mxu1 %v2120_v12 }
 0x15a   : > { %1033 = vmatprep.mubr.bf16.mxu0 %v2566_v44  ;;  %1074 = vmatprep.mubr.bf16.mxu1 %v2566_v44 }
 0x15c   : > { %1004 = vmatpush1.bf16.msra.mxu0 %v2125_v13  ;;  %1045 = vmatpush1.bf16.msra.mxu1 %v2130_v14 }
 0x15d   : > { %1005 = vmatprep.subr.bf16.mxu0 %v2137_v15  ;;  %1046 = vmatprep.subr.bf16.mxu1 %v2143_v16 }
 0x160   : > { %1006 = vmatpush1.bf16.msra.mxu0 %v2151_v17  ;;  %1047 = vmatpush1.bf16.msra.mxu1 %v2158_v18 }
 0x161   : > { %1007 = vmatprep.subr.bf16.mxu0 %v2163_v19  ;;  %1048 = vmatprep.subr.bf16.mxu1 %v2169_v20 }
 0x164   : > { %1008 = vmatpush1.bf16.msra.mxu0 %v2175_v21  ;;  %1049 = vmatpush1.bf16.msra.mxu1 %v2180_v22 }
 0x165   : > { %1009 = vmatprep.subr.bf16.mxu0 %v2185_v23  ;;  %1050 = vmatprep.subr.bf16.mxu1 %v2194_v25 }
 0x168   : > { %1010 = vmatpush1.bf16.msra.mxu0 %v2202_v26  ;;  %1051 = vmatpush1.bf16.msra.mxu1 %v2207_v27 }
 0x169   : > { %1011 = vmatprep.subr.bf16.mxu0 %v2215_v28  ;;  %1052 = vmatprep.subr.bf16.mxu1 %v2221_v29 }
 0x16c   : > { %1012 = vmatpush1.bf16.msra.mxu0 %v2228_v30  ;;  %1053 = vmatpush1.bf16.msra.mxu1 %v2235_v31 }
 0x16d   : > { %1013 = vmatprep.subr.bf16.mxu0 %v2240_v32  ;;  %1054 = vmatprep.subr.bf16.mxu1 %v2246_v33 }
 0x170   : > { %1014 = vmatpush1.bf16.msra.mxu0 %v2252_v34  ;;  %1055 = vmatpush1.bf16.msra.mxu1 %v2259_v35 }
 0x171   : > { %1015 = vmatprep.subr.bf16.mxu0 %v2264_v36  ;;  %1056 = vmatprep.subr.bf16.mxu1 %v2270_v37 }
 0x174   : > { %1016 = vmatpush1.bf16.msra.mxu0 %v2276_v38  ;;  %1057 = vmatpush1.bf16.msra.mxu1 %v2285_v40 }
 0x175   : > { %1126 = vmatprep.subr.bf16.mxu0 %v2090_v7  ;;  %1167 = vmatprep.subr.bf16.mxu1 %v2095_v8 }
 0x217   : > { %v910_v39 = vpop.f32.mrf.mxu0  ;;  %v951_v48 = vpop.f32.mrf.mxu1 }
 0x218   : > { %v958_v49 = vadd.f32 %v910_v39, %v2328_v58  ;;  %v960_v8 = vadd.f32 %v951_v48, %v2330_v61 }
 0x219   : > { %v912_v47 = vpop.f32.mrf.mxu0  ;;  %v953_v53 = vpop.f32.mrf.mxu1 }
 0x21a   : > { %v1577_v51 = vmul.f32 -1.442695, %v958_v49  ;;  %v959_v57 = vadd.f32 %v912_v47, %v2332_v62  ;;  %v961_v7 = vadd.f32 %v953_v53, %v2334_v0 }
 0x21b   : > { %v914_v60 = vpop.f32.mrf.mxu0  ;;  %v955_v3 = vpop.f32.mrf.mxu1 }
 0x21c   : > { %1792 = vpow2.f32 %v1577_v51  ;;  %v1578_v5 = vmul.f32 -1.442695, %v959_v57  ;;  %v1579_v63 = vmul.f32 -1.442695, %v961_v7 }
 0x21d   : > { %v915_v41 = vpop.f32.mrf.mxu0  ;;  %v956_v46 = vpop.f32.mrf.mxu1 }
 0x21e   : > { %1794 = vpow2.f32 %v1578_v5 }
 0x21f   : > { %1796 = vtanh.f32 %v960_v8 }
 0x220   : > { %1798 = vpow2.f32 %v1579_v63  ;;  %v2570_v63 = vld [vmem:[#allocation18_spill] sm:$0xff] }
 0x229   : > { %v1793_v1 = vpop.eup %1792 }
 0x22a   : > { %v965_v58 = vadd.f32 1.0, %v1793_v1 }
 0x22b   : > { %v1795_v54 = vpop.eup %1794 }
 0x22c   : > { %1800 = vrcp.f32 %v965_v58  ;;  %v971_v62 = vadd.f32 1.0, %v1795_v54  ;;  %v1797_v56 = vpop.eup %1796 }
 0x22d   : > { %v1799_v50 = vpop.eup %1798 }
 0x22e   : > { %1802 = vrcp.f32 %v971_v62  ;;  %v978_v2 = vadd.f32 1.0, %v1799_v50 }
 0x230   : > { %1804 = vrcp.f32 %v978_v2 }
 0x239   : > { %v1801_v52 = vpop.eup %1800 }
 0x23a   : > { %v982_v42 = vmul.f32 %v1801_v52, %v1797_v56  ;;  %v2571_v52 = vld [vmem:[#allocation19_spill] sm:$0xff] }
 0x23b   : > { %v1803_v0 = vpop.eup %1802 }
 0x23c   : > { %v981_v61 = vmul.f32 %v1803_v0, %v2353_v55 }
 0x23d   : > { %v1805_v39 = vpop.eup %1804 }
 0x23e   : > { %v983_v6 = vadd.f32 %v982_v42, %v981_v61 }
 0x240   : > { %1806 = vtanh.f32 %v983_v6  ;;  %v2401_v43 = vsel %vm990_vm2, %v983_v6, %v2353_v55 }
 0x24d   : > { %v1807_v48 = vpop.eup %1806 }
 0x24e   : > { %v985_v49 = vmul.f32 %v1807_v48, %v1805_v39 }
 0x250   : > { %v2404_v47 = vsel %vm990_vm2, %v985_v49, %v2356_v24 }
 0x251   : > { %v1000_v53 = vpack.c.bf16 %v2404_v47, %v2404_v47 }
 0x253   : > { %1034 = vmatmul.mubr.bf16.vlgmr.msra.gmra.mxu0 %v1000_v53  ;;  %1075 = vmatmul.mubr.bf16.vlgmr.msra.gmra.mxu1 %v1000_v53  ;;  %v1239_v53 = vstv %s1238_s22 }
 0x254   : > { %1127 = vmatpush1.bf16.msra.mxu0 %v2100_v9  ;;  %1168 = vmatpush1.bf16.msra.mxu1 %v2106_v10  ;;  %vm1240_vm4 = vcmp.eq.s32.totalorder %v1239_v53, 1 }
 0x255   : > { %1128 = vmatprep.subr.bf16.mxu0 %v2113_v11  ;;  %1169 = vmatprep.subr.bf16.mxu1 %v2120_v12 }
 0x256   : > { %1158 = vmatprep.mubr.bf16.mxu0 %v2566_v44  ;;  %1199 = vmatprep.mubr.bf16.mxu1 %v2566_v44 }
 0x258   : > { %1129 = vmatpush1.bf16.msra.mxu0 %v2125_v13  ;;  %1170 = vmatpush1.bf16.msra.mxu1 %v2130_v14 }
 0x259   : > { %1130 = vmatprep.subr.bf16.mxu0 %v2137_v15  ;;  %1171 = vmatprep.subr.bf16.mxu1 %v2143_v16  ;;  %v2567_v15 = vld [vmem:[#allocation15_spill] sm:$0xff] }
 0x25c   : > { %1131 = vmatpush1.bf16.msra.mxu0 %v2151_v17  ;;  %1172 = vmatpush1.bf16.msra.mxu1 %v2158_v18 }
 0x25d   : > { %1132 = vmatprep.subr.bf16.mxu0 %v2163_v19  ;;  %1173 = vmatprep.subr.bf16.mxu1 %v2169_v20 }
 0x260   : > { %1133 = vmatpush1.bf16.msra.mxu0 %v2175_v21  ;;  %1174 = vmatpush1.bf16.msra.mxu1 %v2180_v22  ;;  %v2568_v22 = vld [vmem:[#allocation16_spill] sm:$0xff] }
 0x261   : > { %1134 = vmatprep.subr.bf16.mxu0 %v2185_v23  ;;  %1175 = vmatprep.subr.bf16.mxu1 %v2194_v25  ;;  %v2569_v25 = vld [vmem:[#allocation14_spill] sm:$0xff] }
 0x264   : > { %1135 = vmatpush1.bf16.msra.mxu0 %v2202_v26  ;;  %1176 = vmatpush1.bf16.msra.mxu1 %v2207_v27 }
 0x265   : > { %1136 = vmatprep.subr.bf16.mxu0 %v2215_v28  ;;  %1177 = vmatprep.subr.bf16.mxu1 %v2221_v29 }
 0x268   : > { %1137 = vmatpush1.bf16.msra.mxu0 %v2228_v30  ;;  %1178 = vmatpush1.bf16.msra.mxu1 %v2235_v31 }
 0x269   : > { %1138 = vmatprep.subr.bf16.mxu0 %v2240_v32  ;;  %1179 = vmatprep.subr.bf16.mxu1 %v2246_v33 }
 0x26c   : > { %1139 = vmatpush1.bf16.msra.mxu0 %v2252_v34  ;;  %1180 = vmatpush1.bf16.msra.mxu1 %v2259_v35 }
 0x26d   : > { %1140 = vmatprep.subr.bf16.mxu0 %v2264_v36  ;;  %1181 = vmatprep.subr.bf16.mxu1 %v2270_v37  ;;  %v1114_v36 = vstv %s1113_s20 }
 0x26e   : > { %vm1115_vm3 = vcmp.eq.s32.totalorder %v1114_v36, 1 }
 0x270   : > { %1141 = vmatpush1.bf16.msra.mxu0 %v2276_v38  ;;  %1182 = vmatpush1.bf16.msra.mxu1 %v2285_v40 }
 0x313   : > { %v1035_v9 = vpop.f32.mrf.mxu0  ;;  %v1076_v10 = vpop.f32.mrf.mxu1 }
 0x314   : > { %v1083_v11 = vadd.f32 %v1035_v9, %v2336_v4  ;;  %v1085_v26 = vadd.f32 %v1076_v10, %v2569_v25 }
 0x315   : > { %v1037_v12 = vpop.f32.mrf.mxu0  ;;  %v1078_v13 = vpop.f32.mrf.mxu1 }
 0x316   : > { %v1580_v14 = vmul.f32 -1.442695, %v1083_v11  ;;  %v1084_v16 = vadd.f32 %v1037_v12, %v2567_v15  ;;  %v1086_v23 = vadd.f32 %v1078_v13, %v2568_v22 }
 0x317   : > { %v1039_v17 = vpop.f32.mrf.mxu0  ;;  %v1080_v18 = vpop.f32.mrf.mxu1 }
 0x318   : > { %1808 = vpow2.f32 %v1580_v14  ;;  %v1581_v19 = vmul.f32 -1.442695, %v1084_v16  ;;  %v1582_v27 = vmul.f32 -1.442695, %v1086_v23 }
 0x319   : > { %v1040_v20 = vpop.f32.mrf.mxu0  ;;  %v1081_v21 = vpop.f32.mrf.mxu1 }
 0x31a   : > { %1810 = vpow2.f32 %v1581_v19 }
 0x31b   : > { %1812 = vtanh.f32 %v1085_v26 }
 0x31c   : > { %1814 = vpow2.f32 %v1582_v27 }
 0x325   : > { %v1809_v28 = vpop.eup %1808 }
 0x326   : > { %v1090_v29 = vadd.f32 1.0, %v1809_v28 }
 0x327   : > { %v1811_v30 = vpop.eup %1810 }
 0x328   : > { %1816 = vrcp.f32 %v1090_v29  ;;  %v1096_v31 = vadd.f32 1.0, %v1811_v30  ;;  %v1813_v32 = vpop.eup %1812 }
 0x329   : > { %v1815_v33 = vpop.eup %1814 }
 0x32a   : > { %1818 = vrcp.f32 %v1096_v31  ;;  %v1103_v38 = vadd.f32 1.0, %v1815_v33 }
 0x32c   : > { %1820 = vrcp.f32 %v1103_v38 }
 0x335   : > { %v1817_v34 = vpop.eup %1816 }
 0x336   : > { %v1107_v35 = vmul.f32 %v1817_v34, %v1813_v32 }
 0x337   : > { %v1819_v37 = vpop.eup %1818 }
 0x338   : > { %v1106_v40 = vmul.f32 %v1819_v37, %v2401_v43 }
 0x339   : > { %v1821_v24 = vpop.eup %1820 }
 0x33a   : > { %v1108_v4 = vadd.f32 %v1107_v35, %v1106_v40 }
 0x33c   : > { %1822 = vtanh.f32 %v1108_v4  ;;  %v1117_v55 = vsel %vm1115_vm3, %v1108_v4, %v2401_v43 }
 0x349   : > { %v1823_v44 = vpop.eup %1822 }
 0x34a   : > { %v1110_v51 = vmul.f32 %v1823_v44, %v1821_v24 }
 0x34c   : > { %v1116_v57 = vsel %vm1115_vm3, %v1110_v51, %v2404_v47 }
 0x34d   : > { %v1125_v60 = vpack.c.bf16 %v1116_v57, %v1116_v57 }
 0x34f   : > { %1159 = vmatmul.mubr.bf16.vlgmr.msra.gmra.mxu0 %v1125_v60  ;;  %1200 = vmatmul.mubr.bf16.vlgmr.msra.gmra.mxu1 %v1125_v60 }
 0x40f   : > { %v1160_v3 = vpop.f32.mrf.mxu0  ;;  %v1201_v5 = vpop.f32.mrf.mxu1 }
 0x410   : > { %v1208_v41 = vadd.f32 %v1160_v3, %v2344_v45  ;;  %v1210_v0 = vadd.f32 %v1201_v5, %v2572_v59 }
 0x411   : > { %v1162_v46 = vpop.f32.mrf.mxu0  ;;  %v1203_v7 = vpop.f32.mrf.mxu1 }
 0x412   : > { %v1583_v8 = vmul.f32 -1.442695, %v1208_v41  ;;  %v1209_v1 = vadd.f32 %v1162_v46, %v2570_v63  ;;  %v1211_v42 = vadd.f32 %v1203_v7, %v2571_v52 }
 0x413   : > { %v1164_v58 = vpop.f32.mrf.mxu0  ;;  %v1205_v54 = vpop.f32.mrf.mxu1 }
 0x414   : > { %1824 = vpow2.f32 %v1583_v8  ;;  %v1584_v62 = vmul.f32 -1.442695, %v1209_v1  ;;  %v1585_v2 = vmul.f32 -1.442695, %v1211_v42 }
 0x415   : > { %v1165_v56 = vpop.f32.mrf.mxu0  ;;  %v1206_v50 = vpop.f32.mrf.mxu1 }
 0x416   : > { %1826 = vpow2.f32 %v1584_v62 }
 0x417   : > { %1828 = vtanh.f32 %v1210_v0 }
 0x418   : > { %1830 = vpow2.f32 %v1585_v2 }
 0x421   : > { %v1825_v61 = vpop.eup %1824 }
 0x422   : > { %v1215_v45 = vadd.f32 1.0, %v1825_v61 }
 0x423   : > { %v1827_v6 = vpop.eup %1826 }
 0x424   : > { %1832 = vrcp.f32 %v1215_v45  ;;  %v1221_v43 = vadd.f32 1.0, %v1827_v6  ;;  %v1829_v39 = vpop.eup %1828 }
 0x425   : > { %v1831_v48 = vpop.eup %1830 }
 0x426   : > { %1834 = vrcp.f32 %v1221_v43  ;;  %v1228_v10 = vadd.f32 1.0, %v1831_v48 }
 0x428   : > { %1836 = vrcp.f32 %v1228_v10 }
 0x431   : > { %v1833_v49 = vpop.eup %1832 }
 0x432   : > { %v1232_v47 = vmul.f32 %v1833_v49, %v1829_v39 }
 0x433   : > { %v1835_v9 = vpop.eup %1834 }
 0x434   : > { %v1231_v11 = vmul.f32 %v1835_v9, %v1117_v55 }
 0x435   : > { %v1837_v14 = vpop.eup %1836 }
 0x436   : > { %v1233_v12 = vadd.f32 %v1232_v47, %v1231_v11 }
 0x438   : > { %1838 = vtanh.f32 %v1233_v12  ;;  %v1242_v13 = vsel %vm1240_vm4, %v1233_v12, %v1117_v55 }
 0x439   : > { %1244 = vst [vmem:[#allocation3] sm:$0xff] %v1242_v13 }
 0x445   : > { %v1839_v15 = vpop.eup %1838  ;;  %1248 = sbr.rel (%p1586_p0) target bundleno = 1524 (0x5f4), region = 68 }
 0x446   : > { %v1235_v16 = vmul.f32 %v1839_v15, %v1837_v14 }
 0x448   : > { %v1241_v17 = vsel %vm1240_vm4, %v1235_v16, %v1116_v57 }
 0x449   : > { %1243 = vst [vmem:[#allocation2] sm:$0xff] %v1241_v17 }
 0x44a   : > { %v1264_v18 = vld [vmem:[%s2550_s4 + $0x78] sm:$0xff]  ;;  %v1958_v19 = vmov 0.0   ;;  %v1263_v20 = vld [vmem:[%s2550_s4 + $0x70] sm:$0xff]  ;;  %vm1959_vm5 = vmmov 0   ;;  %v1262_v21 = vld [vmem:[%s2550_s4 + $0x68] sm:$0xff]  ;;  %vm1354_vm6 = vcmask 261120  }
 0x44b   : > { %1616 = vmatprep.subr.mxu0 %v1958_v19  ;;  %1648 = vmatprep.mubr.msk.f32.mxu0 %vm1959_vm5, %v1958_v19  ;;  %v1261_v22 = vld [vmem:[%s2550_s4 + $0x60] sm:$0xff]  ;;  %v1346_v23 = vld [vmem:[%s2552_s6 + $0x18] sm:$0xff]  ;;  %v1259_v26 = vld [vmem:[%s2550_s4 + $0x50] sm:$0xff]  ;;  %vm1428_vm7 = vcmask 64512  }
 0x44c   : > { %1617 = vmatpush3.msra.mxu0 %v1264_v18  ;;  %1651 = vmatprep.subr.mxu1 %v1958_v19  ;;  %v1260_v25 = vld [vmem:[%s2550_s4 + $0x58] sm:$0xff]  ;;  %v1258_v27 = vld [vmem:[%s2550_s4 + $0x48] sm:$0xff]  ;;  %v1257_v28 = vld [vmem:[%s2550_s4 + $0x40] sm:$0xff] }
 0x44d   : > { %1618 = vmatprep.subr.mxu0 %v1958_v19  ;;  %1659 = vmatprep.mubr.msk.f32.mxu1 %vm1959_vm5, %v1958_v19  ;;  %v1256_v29 = vld [vmem:[%s2550_s4 + $0x38] sm:$0xff]  ;;  %v1255_v30 = vld [vmem:[%s2550_s4 + $0x30] sm:$0xff]  ;;  %v1254_v31 = vld [vmem:[%s2550_s4 + $0x28] sm:$0xff] }
 0x44e   : > { %1619 = vmatpush3.msra.mxu0 %v1263_v20  ;;  %1652 = vmatpush3.msra.mxu1 %v1346_v23  ;;  %v1253_v32 = vld [vmem:[%s2550_s4 + $0x20] sm:$0xff]  ;;  %v1252_v33 = vld [vmem:[%s2550_s4 + $0x18] sm:$0xff]  ;;  %v1251_v34 = vld [vmem:[%s2550_s4 + $0x10] sm:$0xff] }
 0x44f   : > { %1620 = vmatprep.subr.mxu0 %v1958_v19  ;;  %1653 = vmatprep.subr.mxu1 %v1958_v19  ;;  %v1250_v35 = vld [vmem:[%s2550_s4 + $0x8] sm:$0xff]  ;;  %v1249_v36 = vld [vmem:[%s2550_s4] sm:$0xff]  ;;  %v1345_v37 = vld [vmem:[%s2552_s6 + $0x10] sm:$0xff] }
 0x450   : > { %1621 = vmatpush3.msra.mxu0 %v1262_v21  ;;  %1654 = vmatpush3.msra.mxu1 %v1345_v37  ;;  %v1344_v38 = vld [vmem:[%s2552_s6 + $0x8] sm:$0xff]  ;;  %v1343_v40 = vld [vmem:[%s2552_s6] sm:$0xff] }
 0x451   : > { %1622 = vmatprep.subr.mxu0 %v1958_v19  ;;  %1655 = vmatprep.subr.mxu1 %v1958_v19  ;;  %v1587_v4 = vld [vmem:[%s2551_s5] ss:$0 sm:$0xff] }
 0x452   : > { %1623 = vmatpush3.msra.mxu0 %v1261_v22  ;;  %1656 = vmatpush3.msra.mxu1 %v1344_v38  ;;  %v1588_v57 = vld [vmem:[%s2553_s7] ss:$0 sm:$0xff] }
 0x453   : > { %1624 = vmatprep.subr.mxu0 %v1958_v19  ;;  %1657 = vmatprep.subr.mxu1 %v1958_v19 }
 0x454   : > { %1625 = vmatpush3.msra.mxu0 %v1260_v25  ;;  %1658 = vmatpush3.msra.mxu1 %v1343_v40 }
 0x455   : > { %1626 = vmatprep.subr.mxu0 %v1958_v19 }
 0x456   : > { %1627 = vmatpush3.msra.mxu0 %v1259_v26 }
 0x457   : > { %1628 = vmatprep.subr.mxu0 %v1958_v19 }
 0x458   : > { %1629 = vmatpush3.msra.mxu0 %v1258_v27 }
 0x459   : > { %1630 = vmatprep.subr.mxu0 %v1958_v19 }
 0x45a   : > { %1631 = vmatpush3.msra.mxu0 %v1257_v28 }
 0x45b   : > { %1632 = vmatprep.subr.mxu0 %v1958_v19 }
 0x45c   : > { %1633 = vmatpush3.msra.mxu0 %v1256_v29 }
 0x45d   : > { %1634 = vmatprep.subr.mxu0 %v1958_v19 }
 0x45e   : > { %1635 = vmatpush3.msra.mxu0 %v1255_v30 }
 0x45f   : > { %1636 = vmatprep.subr.mxu0 %v1958_v19 }
 0x460   : > { %1637 = vmatpush3.msra.mxu0 %v1254_v31 }
 0x461   : > { %1638 = vmatprep.subr.mxu0 %v1958_v19 }
 0x462   : > { %1639 = vmatpush3.msra.mxu0 %v1253_v32 }
 0x463   : > { %1640 = vmatprep.subr.mxu0 %v1958_v19 }
 0x464   : > { %1641 = vmatpush3.msra.mxu0 %v1252_v33 }
 0x465   : > { %1642 = vmatprep.subr.mxu0 %v1958_v19 }
 0x466   : > { %1643 = vmatpush3.msra.mxu0 %v1251_v34 }
 0x467   : > { %1644 = vmatprep.subr.mxu0 %v1958_v19 }
 0x468   : > { %1645 = vmatpush3.msra.mxu0 %v1250_v35 }
 0x469   : > { %1646 = vmatprep.subr.mxu0 %v1958_v19 }
 0x46a   : > { %1647 = vmatpush3.msra.mxu0 %v1249_v36 }
 0x46b   : > { %1649 = vmatmul.mubr.f32.vlgmr.msra.gmra.mxu0 %v1241_v17 }
 0x52b   : > { %v1338_v55 = vpop.f32.mrf.mxu0 }
 0x52c   : > { %v1339_v24 = vadd.f32 %v1587_v4, %v1338_v55 }
 0x52d   : > { %v1650_v44 = vpop.f32.mrf.mxu0 }
 0x52e   : > { %v1342_v51 = vmax.f32 %v1339_v24, 0.0 }
 0x530   : > { %1660 = vmatmul.mubr.msk.f32.vlgmr.msra.gmra.mxu1 %vm1354_vm6, %v1342_v51 }
 0x5f0   : > { %v1424_v60 = vpop.f32.mrf.mxu1 }
 0x5f1   : > { %v1425_v3 = vadd.f32 %v1588_v57, %v1424_v60 }
 0x5f2   : > { %v1661_v5 = vpop.f32.mrf.mxu1 }
 0x5f3   : > { %1429 = vst.msk [vmem:[#allocation10] sm:$0xff] %vm1428_vm7, %v1425_v3 }
 0x5f4 PF: > { %p2522_p1 = scmp.eq.s32.totalorder %s1520_s30, 2  ;;  %s1960_s11 = smov [#allocation10]  }
 0x5f5   : > { %s1439_s15 = sshll.u32 %s1960_s11, 4  ;;  %s1440_s15 = int_to_ptr.vmem [resolvable:$true] %s1439_s15 }
 0x5f6   : > { %s1892_s16 = scalar_lea.vmem %s1440_s15, 128  ;;  %p1899_p9 = scmp.lt.s32.totalorder %s1440_s15, %s1440_s15 }
 0x5f7   : > { %p1893_p2 = scmp.ne.s32.totalorder %s1440_s15, %s1892_s16  ;;  %p1900_p11 = scmp.lt.s32.totalorder %s1892_s16, %s1892_s16 }
 0x5f9   : > { %p1894_p5 = pnand %p1893_p2, %p2522_p1  ;;  %p1901_p10 = por %p1900_p11, %p1899_p9 }
 0x5fb   : > { %p1895_p8 = pneg %p1894_p5 }
 0x5fd   : > { %p1902_p6 = pnand %p1901_p10, %p1895_p8 }
 0x5ff   : > { %1905 = shalt.err (!%p1902_p6)
}
 0x600   : > { %1671 = dma.vmem_to_hbm [thread:$0]  (%p2522_p1), %s1440_s15, 128, %s2554_s8, [#allocation7]  }
 0x601   : > { %1937 = dma.done.wait (%p2522_p1), [#allocation7], 128  }
 0x602   : > { %1939 = vsyncadd (%p2522_p1), [#allocation7], 4294967168 }
 0x603 PF: > { %s21_s29 = sadd.s32 1, %s1950_s29   ;;  %s2574_s27 = smov %s1946_s28 }
 0x604   : > { %p18_p3 = scmp.ge.s32.totalorder %s21_s29, 5   ;;  %s2575_s28 = smov %s2577_s9 }
 0x606   :  { %20 = sbr.rel (!%p18_p3) target bundleno = 4 (0x4), region = 101 }
 0x60b   :  { %1452 = vsyncpa [#allocation6], 1 }
 0x60c   :  { %1454 = vsyncpa [#allocation6 + $0x1], 1 }
 0x60d   :  { %1455 = vsyncpa [#allocation9], 1 }
 0x60e   :  { %1456 = vsyncpa [#allocation7], 1 }
 0x60f   :  { %1458 = vsyncpa [#allocation7 + $0x1], 1 }

</bundles_post_ra>
